<compile_context>
chip_gen: v7x
topology: tpu7x:2x2x1
jax: 0.10.0
libtpu: 0.0.40
codegen_flags: <defaults>
</compile_context>

<pallas_src>
import functools

import jax
import jax.numpy as jnp
from jax.experimental import pallas as pl
from jax.experimental.pallas import tpu as pltpu

LANES = 128        # lane width of the packed parameter slab
W1_ROW = 0         # rows [0, n_states)          : w1 (n_states, hidden), zero-padded
                   # row  n_states               : b1, plus a 1.0 at lane `hidden`
                   #                               (bias-trick lane for fc2's b2)
W2T_ROW = 8        # rows [8, 8 + n_actions)     : w2^T (n_actions, hidden), zero-padded,
                   #                               with b2[a] at lane `hidden` of row a
SLAB_ROWS = 16     # sublane-multiple total (8 KiB slab)


def _round_up(v, m):
    return ((v + m - 1) // m) * m


def pack_params(w1, b1, w2, b2):
    """Pack (w1, b1, w2, b2) into one zero-padded (SLAB_ROWS, LANES) f32 slab.

    Layout (all zero-padded on lanes):
      rows [0, n_states)           : w1[k, :hidden]
      row  n_states                : b1[:hidden], and 1.0 at lane `hidden`
      rows [W2T_ROW, +n_actions)   : w2[:, a] in lanes [0, hidden), b2[a] at lane `hidden`
    The constant-1 lane survives ReLU (relu(1)=1), so the fc2 lane reduction
    sum(h * w2T_row_a) already includes the b2[a] bias term.
    """
    n_states, hidden = w1.shape
    hidden2, n_actions = w2.shape
    assert hidden == hidden2
    assert n_states + 1 <= W2T_ROW, "w1+b1 rows must fit below the w2^T rows"
    assert W2T_ROW + n_actions <= SLAB_ROWS, "too many actions for the slab"
    assert hidden + 1 <= LANES, "hidden (+ bias-trick lane) must fit in 128 lanes"

    slab = jnp.zeros((SLAB_ROWS, LANES), jnp.float32)
    slab = slab.at[W1_ROW:W1_ROW + n_states, :hidden].set(w1.astype(jnp.float32))
    b1_row = (jnp.zeros((LANES,), jnp.float32)
              .at[:hidden].set(b1.reshape(-1).astype(jnp.float32))
              .at[hidden].set(1.0))                       # bias-trick lane
    slab = slab.at[W1_ROW + n_states, :].set(b1_row)
    slab = slab.at[W2T_ROW:W2T_ROW + n_actions, :hidden].set(w2.T.astype(jnp.float32))
    slab = slab.at[W2T_ROW:W2T_ROW + n_actions, hidden].set(
        b2.reshape(-1).astype(jnp.float32))
    return slab


def net_kernel(x_ref, p_ref, o_ref, *, n_states, n_actions):
    x = x_ref[...]                                        # (TB, n_states)

    # ---- fc1 + b1 as VPU broadcast-FMAs (K = n_states is tiny; MXU skipped).
    h = p_ref[pl.ds(W1_ROW + n_states, 1), :]             # b1 row (+ 1.0 trick lane)
    for k in range(n_states):                             # static unroll, n_states = 4
        h = h + x[:, k:k + 1] * p_ref[pl.ds(W1_ROW + k, 1), :]
    h = jnp.maximum(h, 0.0)                               # (TB, LANES); relu(1)=1 keeps
                                                          # the trick lane, padded lanes = 0

    # ---- fc2 + b2 as n_actions exact-f32 cross-lane reductions (no bf16 MXU pass).
    # Zero lanes beyond `hidden` contribute nothing; lane `hidden` adds b2[a].
    for a in range(n_actions):                            # static unroll, n_actions = 2
        wa = p_ref[pl.ds(W2T_ROW + a, 1), :]              # (1, LANES)
        o_ref[:, a:a + 1] = jnp.sum(h * wa, axis=-1, keepdims=True)


def net_forward(x, params_slab, n_actions, *, max_block_b=1024):
    """x: (B, n_states) f32; returns (B, n_actions) f32 == relu(x@w1+b1)@w2+b2."""
    B, n_states = x.shape
    # Few, large batch tiles: single grid step for B <= max_block_b; multi-step
    # (and a useful 2-TC "parallel" split on v7x) only once tiles are >=1024 rows.
    block_b = min(_round_up(B, 8), max_block_b)
    b_pad = _round_up(B, block_b)
    if b_pad != B:
        x = jnp.pad(x, ((0, b_pad - B), (0, 0)))

    out = pl.pallas_call(
        functools.partial(net_kernel, n_states=n_states, n_actions=n_actions),
        out_shape=jax.ShapeDtypeStruct((b_pad, n_actions), jnp.float32),
        grid_spec=pltpu.PrefetchScalarGridSpec(
            num_scalar_prefetch=0,
            grid=(b_pad // block_b,),
            in_specs=[
                # activations: gridded over the batch (envs) axis
                pl.BlockSpec((block_b, n_states), lambda i: (i, 0)),
                # packed weights: same block every step -> one DMA, VMEM-resident
                pl.BlockSpec((SLAB_ROWS, LANES), lambda i: (0, 0)),
            ],
            # narrow output: last block dim == full array extent (legal); 64x less
            # HBM writeback than a padded (B, 128) slab.
            out_specs=pl.BlockSpec((block_b, n_actions), lambda i: (i, 0)),
        ),
        compiler_params=pltpu.CompilerParams(
            dimension_semantics=("parallel",),   # shard batch tiles across TCs on v7x
        ),
    )(x, params_slab)
    return out[:B] if b_pad != B else out


def init_params(key, n_states, n_actions, hidden=10):
    """Mirror Net.__init__: weights ~ Normal(0, 0.1); biases PyTorch-default
    U(-1/sqrt(fan_in), 1/sqrt(fan_in)). Weights stored as (in, out) so the
    kernel computes x @ W + b == PyTorch's x @ W.T + b."""
    k1, k2, k3, k4 = jax.random.split(key, 4)
    w1 = 0.1 * jax.random.normal(k1, (n_states, hidden), dtype=jnp.float32)
    w2 = 0.1 * jax.random.normal(k2, (hidden, n_actions), dtype=jnp.float32)
    bound1 = 1.0 / float(n_states) ** 0.5
    bound2 = 1.0 / float(hidden) ** 0.5
    b1 = jax.random.uniform(k3, (hidden,), minval=-bound1, maxval=bound1, dtype=jnp.float32)
    b2 = jax.random.uniform(k4, (n_actions,), minval=-bound2, maxval=bound2, dtype=jnp.float32)
    return w1, b1, w2, b2


if __name__ == "__main__":
    # CartPole: n_states=4 observations, n_actions=2 (left/right).
    # Batch = 256 vectorized envs -> one grid step (block_b = 256).
    n_states, n_actions, hidden, batch = 4, 2, 10, 256
    key = jax.random.PRNGKey(0)
    kx, kp = jax.random.split(key)

    x = jax.random.normal(kx, (batch, n_states), dtype=jnp.float32)
    w1, b1, w2, b2 = init_params(kp, n_states, n_actions, hidden)
    params = pack_params(w1, b1, w2, b2)

    fwd = jax.jit(functools.partial(net_forward, n_actions=n_actions))
    out = fwd(x, params)
    jax.block_until_ready(out)

    # Reference in plain JAX at HIGHEST precision (kernel math is exact f32).
    ref_h = jnp.maximum(jnp.dot(x, w1, precision=jax.lax.Precision.HIGHEST) + b1, 0.0)
    ref = jnp.dot(ref_h, w2, precision=jax.lax.Precision.HIGHEST) + b2
    assert out.shape == (batch, n_actions)
    assert jnp.allclose(out, ref, atol=1e-5, rtol=1e-5), float(jnp.max(jnp.abs(out - ref)))

    print("KERNEL_OK")
</pallas_src>

<mosaic_0001>
module attributes {stable_mosaic.version = 11 : i64} {
  func.func @net_kernel(%arg0: i32, %arg1: memref<256x4xf32, #tpu.memory_space<vmem>>, %arg2: memref<16x128xf32, #tpu.memory_space<vmem>>, %arg3: memref<256x2xf32, #tpu.memory_space<vmem>>) attributes {dimension_semantics = [#tpu.dimension_semantics<parallel>], iteration_bounds = array<i64: 1>, scalar_prefetch = 0 : i64, scratch_operands = 0 : i64, tpu.core_type = #tpu.core_type<tc>, window_params = [{transform_indices = @transform_0, window_bounds = array<i64: 256, 4>}, {pipeline_mode = #tpu.pipeline_mode<synchronous>, transform_indices = @transform_1, window_bounds = array<i64: 16, 128>}, {transform_indices = @transform_2, window_bounds = array<i64: 256, 2>}]} {
    %c0 = arith.constant 0 : index
    %c0_0 = arith.constant 0 : index
    %0 = vector.load %arg1[%c0, %c0_0] : memref<256x4xf32, #tpu.memory_space<vmem>>, vector<256x4xf32>
    %c4 = arith.constant 4 : index
    %c0_1 = arith.constant 0 : index
    %1 = vector.load %arg2[%c4, %c0_1] : memref<16x128xf32, #tpu.memory_space<vmem>>, vector<1x128xf32>
    %2 = vector.extract_strided_slice %0 {offsets = [0, 0], sizes = [256, 1], strides = [1, 1]} : vector<256x4xf32> to vector<256x1xf32>
    %c0_2 = arith.constant 0 : index
    %c0_3 = arith.constant 0 : index
    %3 = vector.load %arg2[%c0_2, %c0_3] : memref<16x128xf32, #tpu.memory_space<vmem>>, vector<1x128xf32>
    %4 = vector.broadcast %2 : vector<256x1xf32> to vector<256x128xf32>
    %5 = vector.broadcast %3 : vector<1x128xf32> to vector<256x128xf32>
    %6 = arith.mulf %4, %5 : vector<256x128xf32>
    %7 = vector.broadcast %1 : vector<1x128xf32> to vector<256x128xf32>
    %8 = arith.addf %7, %6 : vector<256x128xf32>
    %9 = vector.extract_strided_slice %0 {offsets = [0, 1], sizes = [256, 1], strides = [1, 1]} : vector<256x4xf32> to vector<256x1xf32>
    %c1 = arith.constant 1 : index
    %c0_4 = arith.constant 0 : index
    %10 = vector.load %arg2[%c1, %c0_4] : memref<16x128xf32, #tpu.memory_space<vmem>>, vector<1x128xf32>
    %11 = vector.broadcast %9 : vector<256x1xf32> to vector<256x128xf32>
    %12 = vector.broadcast %10 : vector<1x128xf32> to vector<256x128xf32>
    %13 = arith.mulf %11, %12 : vector<256x128xf32>
    %14 = arith.addf %8, %13 : vector<256x128xf32>
    %15 = vector.extract_strided_slice %0 {offsets = [0, 2], sizes = [256, 1], strides = [1, 1]} : vector<256x4xf32> to vector<256x1xf32>
    %c2 = arith.constant 2 : index
    %c0_5 = arith.constant 0 : index
    %16 = vector.load %arg2[%c2, %c0_5] : memref<16x128xf32, #tpu.memory_space<vmem>>, vector<1x128xf32>
    %17 = vector.broadcast %15 : vector<256x1xf32> to vector<256x128xf32>
    %18 = vector.broadcast %16 : vector<1x128xf32> to vector<256x128xf32>
    %19 = arith.mulf %17, %18 : vector<256x128xf32>
    %20 = arith.addf %14, %19 : vector<256x128xf32>
    %21 = vector.extract_strided_slice %0 {offsets = [0, 3], sizes = [256, 1], strides = [1, 1]} : vector<256x4xf32> to vector<256x1xf32>
    %c3 = arith.constant 3 : index
    %c0_6 = arith.constant 0 : index
    %22 = vector.load %arg2[%c3, %c0_6] : memref<16x128xf32, #tpu.memory_space<vmem>>, vector<1x128xf32>
    %23 = vector.broadcast %21 : vector<256x1xf32> to vector<256x128xf32>
    %24 = vector.broadcast %22 : vector<1x128xf32> to vector<256x128xf32>
    %25 = arith.mulf %23, %24 : vector<256x128xf32>
    %26 = arith.addf %20, %25 : vector<256x128xf32>
    %cst = arith.constant 0.000000e+00 : f32
    %27 = vector.broadcast %cst : f32 to vector<256x128xf32>
    %28 = arith.maximumf %26, %27 : vector<256x128xf32>
    %c8 = arith.constant 8 : index
    %c0_7 = arith.constant 0 : index
    %29 = vector.load %arg2[%c8, %c0_7] : memref<16x128xf32, #tpu.memory_space<vmem>>, vector<1x128xf32>
    %30 = vector.broadcast %29 : vector<1x128xf32> to vector<256x128xf32>
    %31 = arith.mulf %28, %30 : vector<256x128xf32>
    %cst_8 = arith.constant dense<0.000000e+00> : vector<256xf32>
    %32 = vector.multi_reduction <add>, %31, %cst_8 [1] : vector<256x128xf32> to vector<256xf32>
    %33 = vector.shape_cast %32 : vector<256xf32> to vector<256x1xf32>
    %c0_9 = arith.constant 0 : index
    %c0_10 = arith.constant 0 : index
    %34 = vector.load %arg3[%c0_9, %c0_10] : memref<256x2xf32, #tpu.memory_space<vmem>>, vector<256x1xf32>
    tpu.vector_store %arg3[%c0_9, %c0_10], %33 {strides = array<i32>} : memref<256x2xf32, #tpu.memory_space<vmem>>, vector<256x1xf32>,
    %c9 = arith.constant 9 : index
    %c0_11 = arith.constant 0 : index
    %35 = vector.load %arg2[%c9, %c0_11] : memref<16x128xf32, #tpu.memory_space<vmem>>, vector<1x128xf32>
    %36 = vector.broadcast %35 : vector<1x128xf32> to vector<256x128xf32>
    %37 = arith.mulf %28, %36 : vector<256x128xf32>
    %cst_12 = arith.constant dense<0.000000e+00> : vector<256xf32>
    %38 = vector.multi_reduction <add>, %37, %cst_12 [1] : vector<256x128xf32> to vector<256xf32>
    %39 = vector.shape_cast %38 : vector<256xf32> to vector<256x1xf32>
    %c0_13 = arith.constant 0 : index
    %c1_14 = arith.constant 1 : index
    %40 = vector.load %arg3[%c0_13, %c1_14] : memref<256x2xf32, #tpu.memory_space<vmem>>, vector<256x1xf32>
    tpu.vector_store %arg3[%c0_13, %c1_14], %39 {strides = array<i32>} : memref<256x2xf32, #tpu.memory_space<vmem>>, vector<256x1xf32>,
    return
  }
  func.func @transform_0(%arg0: i32) -> (i32, i32) {
    %c0_i32 = arith.constant 0 : i32
    %c0_i32_0 = arith.constant 0 : i32
    return %arg0, %c0_i32 : i32, i32
  }
  func.func @transform_1(%arg0: i32) -> (i32, i32) {
    %c0_i32 = arith.constant 0 : i32
    %c0_i32_0 = arith.constant 0 : i32
    %c0_i32_1 = arith.constant 0 : i32
    return %c0_i32, %c0_i32_0 : i32, i32
  }
  func.func @transform_2(%arg0: i32) -> (i32, i32) {
    %c0_i32 = arith.constant 0 : i32
    %c0_i32_0 = arith.constant 0 : i32
    return %arg0, %c0_i32 : i32, i32
  }
}

</mosaic_0001>

<bundles_post_ra>
// kernel: net_forward.1
= control target key start
LH: loop header
LB: loop body
LE: loop exit
PB: predicated region body
PF: predicated region fallthrough
CT: control target
= control target key end

     0   :  { %v1191_v0 = vmov 0   ;;  %v1192_v33 = vmov 1   ;;  %v1193_v36 = vmov 2   ;;  %vm1001_vm0 = vcmask 7168   ;;  %s2609_s0 = inlined_call_operand.vmem [shape: f32[256,4], index: 0, kind: input, shape index: {}]   ;;  %s2610_s1 = inlined_call_operand.vmem [shape: f32[16,128], index: 1, kind: input, shape index: {}]   ;;  %s2611_s2 = inlined_call_operand.vmem [shape: f32[256,2], index: 2, kind: output, shape index: {}]  }
   0x1   :  { %1184 = vset.pattern.permute.xlu1 %v1191_v0  ;;  %1183 = vset.pattern.permute.xlu0 %v1191_v0  ;;  %v1213_v1 = vld [vmem:[%s2609_s0 + $0x10] sm:$0xff]  ;;  %v1218_v2 = vld [vmem:[%s2609_s0] sm:$0xff]  ;;  %v1225_v3 = vld [vmem:[%s2609_s0 + $0x18] sm:$0xff]  ;;  %vm1135_vm1 = vcmask 15368  }
   0x2   :  { %57 = vperm.xlu1 %1184, %v1213_v1   ;;  %47 = vperm.xlu0 %1183, %v1218_v2   ;;  %v1230_v4 = vld [vmem:[%s2609_s0 + $0x8] sm:$0xff]  ;;  %v1242_v6 = vld [vmem:[%s2609_s0 + $0x20] sm:$0xff]  ;;  %v1249_v7 = vld [vmem:[%s2609_s0 + $0x38] sm:$0xff] }
   0x3   :  { %v1237_v5 = vld [vmem:[%s2609_s0 + $0x28] sm:$0xff]  ;;  %v1254_v8 = vld [vmem:[%s2609_s0 + $0x30] sm:$0xff]  ;;  %v1266_v10 = vld [vmem:[%s2609_s0 + $0x40] sm:$0xff] }
   0x4   :  { %v1261_v9 = vld [vmem:[%s2609_s0 + $0x48] sm:$0xff]  ;;  %v1273_v11 = vld [vmem:[%s2609_s0 + $0x58] sm:$0xff]  ;;  %v1278_v12 = vld [vmem:[%s2609_s0 + $0x50] sm:$0xff] }
   0x5   :  { %v1285_v13 = vld [vmem:[%s2609_s0 + $0x68] sm:$0xff]  ;;  %v1290_v14 = vld [vmem:[%s2609_s0 + $0x60] sm:$0xff]  ;;  %v1297_v15 = vld [vmem:[%s2609_s0 + $0x78] sm:$0xff] }
   0x6   :  { %62 = vperm.xlu1 %1184, %v1225_v3   ;;  %52 = vperm.xlu0 %1183, %v1230_v4   ;;  %v1302_v16 = vld [vmem:[%s2609_s0 + $0x70] sm:$0xff]  ;;  %v1309_v17 = vld [vmem:[%s2609_s0 + $0x88] sm:$0xff]  ;;  %v1314_v18 = vld [vmem:[%s2609_s0 + $0x80] sm:$0xff] }
   0x7   :  { %v1321_v19 = vld [vmem:[%s2609_s0 + $0x98] sm:$0xff]  ;;  %v1326_v20 = vld [vmem:[%s2609_s0 + $0x90] sm:$0xff]  ;;  %v1333_v21 = vld [vmem:[%s2609_s0 + $0xa8] sm:$0xff] }
   0x8   :  { %v1338_v22 = vld [vmem:[%s2609_s0 + $0xa0] sm:$0xff]  ;;  %v1345_v23 = vld [vmem:[%s2609_s0 + $0xb8] sm:$0xff]  ;;  %v1350_v24 = vld [vmem:[%s2609_s0 + $0xb0] sm:$0xff] }
   0x9   :  { %v1357_v25 = vld [vmem:[%s2609_s0 + $0xc8] sm:$0xff]  ;;  %v1362_v26 = vld [vmem:[%s2609_s0 + $0xc0] sm:$0xff]  ;;  %v1369_v27 = vld [vmem:[%s2609_s0 + $0xd8] sm:$0xff] }
   0xa   :  { %72 = vperm.xlu1 %1184, %v1237_v5   ;;  %67 = vperm.xlu0 %1183, %v1242_v6   ;;  %v1374_v28 = vld [vmem:[%s2609_s0 + $0xd0] sm:$0xff]  ;;  %v1381_v29 = vld [vmem:[%s2609_s0 + $0xe8] sm:$0xff]  ;;  %v1386_v30 = vld [vmem:[%s2609_s0 + $0xe0] sm:$0xff] }
   0xb   :  { %v1393_v31 = vld [vmem:[%s2609_s0 + $0xf8] sm:$0xff]  ;;  %v1398_v32 = vld [vmem:[%s2609_s0 + $0xf0] sm:$0xff]  ;;  %v1521_v63 = vld [vmem:[%s2610_s1] ss:$0 sm:$0xff] }
   0xe   :  { %82 = vperm.xlu1 %1184, %v1249_v7   ;;  %77 = vperm.xlu0 %1183, %v1254_v8  }
  0x12   :  { %92 = vperm.xlu1 %1184, %v1261_v9   ;;  %87 = vperm.xlu0 %1183, %v1266_v10  }
  0x16   :  { %102 = vperm.xlu1 %1184, %v1273_v11   ;;  %97 = vperm.xlu0 %1183, %v1278_v12  }
  0x1a   :  { %112 = vperm.xlu1 %1184, %v1285_v13   ;;  %107 = vperm.xlu0 %1183, %v1290_v14  }
  0x1e   :  { %122 = vperm.xlu1 %1184, %v1297_v15   ;;  %117 = vperm.xlu0 %1183, %v1302_v16  }
  0x22   :  { %132 = vperm.xlu1 %1184, %v1309_v17   ;;  %127 = vperm.xlu0 %1183, %v1314_v18  }
  0x26   :  { %142 = vperm.xlu1 %1184, %v1321_v19   ;;  %137 = vperm.xlu0 %1183, %v1326_v20  }
  0x2a   :  { %152 = vperm.xlu1 %1184, %v1333_v21   ;;  %147 = vperm.xlu0 %1183, %v1338_v22  }
  0x2e   :  { %162 = vperm.xlu1 %1184, %v1345_v23   ;;  %157 = vperm.xlu0 %1183, %v1350_v24  }
  0x32   :  { %172 = vperm.xlu1 %1184, %v1357_v25   ;;  %167 = vperm.xlu0 %1183, %v1362_v26  }
  0x36   :  { %182 = vperm.xlu1 %1184, %v1369_v27   ;;  %177 = vperm.xlu0 %1183, %v1374_v28  }
  0x3a   :  { %192 = vperm.xlu1 %1184, %v1381_v29   ;;  %187 = vperm.xlu0 %1183, %v1386_v30  }
  0x3e   :  { %202 = vperm.xlu1 %1184, %v1393_v31   ;;  %197 = vperm.xlu0 %1183, %v1398_v32  }
  0x42   :  { %1186 = vset.pattern.permute.xlu1 %v1192_v33  ;;  %1185 = vset.pattern.permute.xlu0 %v1192_v33 }
  0x43   :  { %283 = vperm.xlu1 %1186, %v1230_v4   ;;  %279 = vperm.xlu0 %1185, %v1218_v2  }
  0x47   :  { %287 = vperm.xlu1 %1186, %v1213_v1   ;;  %291 = vperm.xlu0 %1185, %v1225_v3  }
  0x4b   :  { %295 = vperm.xlu1 %1186, %v1242_v6   ;;  %299 = vperm.xlu0 %1185, %v1237_v5  }
  0x4f   :  { %303 = vperm.xlu1 %1186, %v1254_v8   ;;  %307 = vperm.xlu0 %1185, %v1249_v7  }
  0x53   :  { %311 = vperm.xlu1 %1186, %v1266_v10   ;;  %315 = vperm.xlu0 %1185, %v1261_v9  }
  0x57   :  { %319 = vperm.xlu1 %1186, %v1278_v12   ;;  %323 = vperm.xlu0 %1185, %v1273_v11  }
  0x5b   :  { %327 = vperm.xlu1 %1186, %v1290_v14   ;;  %331 = vperm.xlu0 %1185, %v1285_v13  }
  0x5f   :  { %335 = vperm.xlu1 %1186, %v1302_v16   ;;  %339 = vperm.xlu0 %1185, %v1297_v15  }
  0x63   :  { %343 = vperm.xlu1 %1186, %v1314_v18   ;;  %347 = vperm.xlu0 %1185, %v1309_v17  }
  0x67   :  { %351 = vperm.xlu1 %1186, %v1326_v20   ;;  %355 = vperm.xlu0 %1185, %v1321_v19  }
  0x6b   :  { %359 = vperm.xlu1 %1186, %v1338_v22   ;;  %363 = vperm.xlu0 %1185, %v1333_v21  }
  0x6f   :  { %367 = vperm.xlu1 %1186, %v1350_v24   ;;  %371 = vperm.xlu0 %1185, %v1345_v23  }
  0x73   :  { %375 = vperm.xlu1 %1186, %v1362_v26   ;;  %379 = vperm.xlu0 %1185, %v1357_v25  }
  0x77   :  { %383 = vperm.xlu1 %1186, %v1374_v28   ;;  %387 = vperm.xlu0 %1185, %v1369_v27  }
  0x7b   :  { %391 = vperm.xlu1 %1186, %v1386_v30   ;;  %395 = vperm.xlu0 %1185, %v1381_v29  }
  0x7f   :  { %399 = vperm.xlu1 %1186, %v1398_v32   ;;  %403 = vperm.xlu0 %1185, %v1393_v31  }
  0x81   :  { %v1434_v34 = vpop.permute.xlu1 %57  ;;  %v1436_v35 = vpop.permute.xlu0 %47 }
  0x83   :  { %1187 = vset.pattern.permute.xlu1 %v1193_v36  ;;  %1188 = vset.pattern.permute.xlu0 %v1193_v36 }
  0x84   :  { %476 = vperm.xlu1 %1187, %v1218_v2   ;;  %480 = vperm.xlu0 %1188, %v1230_v4  }
  0x85   :  { %v1440_v37 = vpop.permute.xlu1 %62  ;;  %v1442_v38 = vpop.permute.xlu0 %52 }
  0x88   :  { %484 = vperm.xlu1 %1187, %v1213_v1   ;;  %492 = vperm.xlu0 %1188, %v1242_v6  }
  0x89   :  { %v1446_v39 = vpop.permute.xlu1 %72  ;;  %v1448_v40 = vpop.permute.xlu0 %67 }
  0x8c   :  { %488 = vperm.xlu1 %1187, %v1225_v3   ;;  %500 = vperm.xlu0 %1188, %v1254_v8  }
  0x8d   :  { %v1452_v41 = vpop.permute.xlu1 %82  ;;  %v1454_v42 = vpop.permute.xlu0 %77 }
  0x90   :  { %496 = vperm.xlu1 %1187, %v1237_v5   ;;  %508 = vperm.xlu0 %1188, %v1266_v10  }
  0x91   :  { %v1458_v43 = vpop.permute.xlu1 %92  ;;  %v1460_v44 = vpop.permute.xlu0 %87 }
  0x94   :  { %504 = vperm.xlu1 %1187, %v1249_v7   ;;  %516 = vperm.xlu0 %1188, %v1278_v12  }
  0x95   :  { %v1464_v45 = vpop.permute.xlu1 %102  ;;  %v1466_v46 = vpop.permute.xlu0 %97 }
  0x98   :  { %512 = vperm.xlu1 %1187, %v1261_v9   ;;  %524 = vperm.xlu0 %1188, %v1290_v14  }
  0x99   :  { %v1470_v47 = vpop.permute.xlu1 %112  ;;  %v1472_v48 = vpop.permute.xlu0 %107 }
  0x9c   :  { %520 = vperm.xlu1 %1187, %v1273_v11   ;;  %532 = vperm.xlu0 %1188, %v1302_v16  }
  0x9d   :  { %v1476_v49 = vpop.permute.xlu1 %122  ;;  %v1478_v50 = vpop.permute.xlu0 %117 }
  0xa0   :  { %528 = vperm.xlu1 %1187, %v1285_v13   ;;  %540 = vperm.xlu0 %1188, %v1314_v18  }
  0xa1   :  { %v1482_v51 = vpop.permute.xlu1 %132  ;;  %v1484_v52 = vpop.permute.xlu0 %127 }
  0xa4   :  { %536 = vperm.xlu1 %1187, %v1297_v15   ;;  %548 = vperm.xlu0 %1188, %v1326_v20  }
  0xa5   :  { %v1488_v53 = vpop.permute.xlu1 %142  ;;  %v1490_v54 = vpop.permute.xlu0 %137 }
  0xa8   :  { %544 = vperm.xlu1 %1187, %v1309_v17   ;;  %556 = vperm.xlu0 %1188, %v1338_v22  }
  0xa9   :  { %v1494_v55 = vpop.permute.xlu1 %152  ;;  %v1496_v56 = vpop.permute.xlu0 %147 }
  0xac   :  { %552 = vperm.xlu1 %1187, %v1321_v19   ;;  %564 = vperm.xlu0 %1188, %v1350_v24  }
  0xad   :  { %v1500_v57 = vpop.permute.xlu1 %162  ;;  %v1502_v58 = vpop.permute.xlu0 %157 }
  0xae   :  { %2624 = vst [vmem:[#allocation2_spill] sm:$0xff] %v1500_v57  ;;  %2625 = vst [vmem:[#allocation3_spill] sm:$0xff] %v1502_v58 }
  0xb0   :  { %560 = vperm.xlu1 %1187, %v1333_v21   ;;  %572 = vperm.xlu0 %1188, %v1362_v26  }
  0xb1   :  { %v1506_v59 = vpop.permute.xlu1 %172  ;;  %v1508_v60 = vpop.permute.xlu0 %167 }
  0xb2   :  { %2626 = vst [vmem:[#allocation4_spill] sm:$0xff] %v1506_v59  ;;  %2627 = vst [vmem:[#allocation5_spill] sm:$0xff] %v1508_v60 }
  0xb4   :  { %568 = vperm.xlu1 %1187, %v1345_v23   ;;  %580 = vperm.xlu0 %1188, %v1374_v28  }
  0xb5   :  { %v1512_v61 = vpop.permute.xlu1 %182  ;;  %v1514_v62 = vpop.permute.xlu0 %177 }
  0xb6   :  { %2628 = vst [vmem:[#allocation6_spill] sm:$0xff] %v1512_v61  ;;  %2629 = vst [vmem:[#allocation7_spill] sm:$0xff] %v1514_v62  ;;  %v1529_v61 = vld [vmem:[%s2610_s1 + $0x4] ss:$0 sm:$0xff] }
  0xb8   :  { %576 = vperm.xlu1 %1187, %v1357_v25   ;;  %588 = vperm.xlu0 %1188, %v1386_v30  }
  0xb9   :  { %v1523_v0 = vpop.permute.xlu1 %192  ;;  %v188_v33 = vpop.permute.xlu0 %187 }
  0xba   :  { %2630 = vst [vmem:[#allocation8_spill] sm:$0xff] %v1523_v0  ;;  %v237_v36 = vmul.f32 %v1521_v63, %v188_v33  ;;  %v1194_v33 = vmov 3  }
  0xbc   :  { %v1532_v62 = vadd.f32 %v1529_v61, %v237_v36  ;;  %584 = vperm.xlu1 %1187, %v1369_v27   ;;  %596 = vperm.xlu0 %1188, %v1398_v32  }
  0xbd   :  { %v1536_v60 = vpop.permute.xlu1 %202  ;;  %v198_v59 = vpop.permute.xlu0 %197 }
  0xbe   :  { %2631 = vst [vmem:[#allocation9_spill] sm:$0xff] %v1536_v60  ;;  %v239_v0 = vmul.f32 %v1521_v63, %v198_v59 }
  0xc0   :  { %v1540_v58 = vadd.f32 %v1529_v61, %v239_v0  ;;  %592 = vperm.xlu1 %1187, %v1381_v29   ;;  %1189 = vset.pattern.permute.xlu0 %v1194_v33 }
  0xc1   :  { %673 = vperm.xlu0 %1189, %v1218_v2  }
  0xc2   :  { %v1544_v36 = vpop.permute.xlu1 %283  ;;  %v1546_v57 = vpop.permute.xlu0 %279 }
  0xc3   :  { %2632 = vst [vmem:[#allocation10_spill] sm:$0xff] %v1544_v36 }
  0xc4   :  { %600 = vperm.xlu1 %1187, %v1393_v31  }
  0xc5   :  { %685 = vperm.xlu0 %1189, %v1225_v3  }
  0xc6   :  { %v1550_v60 = vpop.permute.xlu1 %287  ;;  %v1552_v59 = vpop.permute.xlu0 %291 }
  0xc8   :  { %1190 = vset.pattern.permute.xlu1 %v1194_v33 }
  0xc9   :  { %677 = vperm.xlu1 %1190, %v1230_v4   ;;  %693 = vperm.xlu0 %1189, %v1237_v5  }
  0xca   :  { %v1556_v0 = vpop.permute.xlu1 %295  ;;  %v1558_v2 = vpop.permute.xlu0 %299 }
  0xcd   :  { %681 = vperm.xlu1 %1190, %v1213_v1   ;;  %701 = vperm.xlu0 %1189, %v1249_v7  }
  0xce   :  { %v1562_v36 = vpop.permute.xlu1 %303  ;;  %v1564_v3 = vpop.permute.xlu0 %307 }
  0xd1   :  { %689 = vperm.xlu1 %1190, %v1242_v6   ;;  %709 = vperm.xlu0 %1189, %v1261_v9  }
  0xd2   :  { %v1568_v33 = vpop.permute.xlu1 %311  ;;  %v1570_v4 = vpop.permute.xlu0 %315 }
  0xd5   :  { %697 = vperm.xlu1 %1190, %v1254_v8   ;;  %717 = vperm.xlu0 %1189, %v1273_v11  }
  0xd6   :  { %v1574_v5 = vpop.permute.xlu1 %319  ;;  %v1576_v1 = vpop.permute.xlu0 %323 }
  0xd9   :  { %705 = vperm.xlu1 %1190, %v1266_v10   ;;  %725 = vperm.xlu0 %1189, %v1285_v13  }
  0xda   :  { %v1580_v7 = vpop.permute.xlu1 %327  ;;  %v1582_v6 = vpop.permute.xlu0 %331 }
  0xdb   :  { %2633 = vst [vmem:[#allocation11_spill] sm:$0xff] %v1580_v7 }
  0xdd   :  { %713 = vperm.xlu1 %1190, %v1278_v12   ;;  %733 = vperm.xlu0 %1189, %v1297_v15  }
  0xde   :  { %v1586_v9 = vpop.permute.xlu1 %335  ;;  %v1588_v8 = vpop.permute.xlu0 %339 }
  0xdf   :  { %2634 = vst [vmem:[#allocation12_spill] sm:$0xff] %v1586_v9 }
  0xe1   :  { %721 = vperm.xlu1 %1190, %v1290_v14   ;;  %741 = vperm.xlu0 %1189, %v1309_v17  }
  0xe2   :  { %v1592_v11 = vpop.permute.xlu1 %343  ;;  %v1594_v10 = vpop.permute.xlu0 %347 }
  0xe3   :  { %2635 = vst [vmem:[#allocation13_spill] sm:$0xff] %v1592_v11  ;;  %2636 = vst [vmem:[#allocation14_spill] sm:$0xff] %v1594_v10 }
  0xe5   :  { %729 = vperm.xlu1 %1190, %v1302_v16   ;;  %749 = vperm.xlu0 %1189, %v1321_v19  }
  0xe6   :  { %v1598_v13 = vpop.permute.xlu1 %351  ;;  %v1600_v12 = vpop.permute.xlu0 %355 }
  0xe7   :  { %2637 = vst [vmem:[#allocation15_spill] sm:$0xff] %v1598_v13  ;;  %2638 = vst [vmem:[#allocation16_spill] sm:$0xff] %v1600_v12 }
  0xe9   :  { %737 = vperm.xlu1 %1190, %v1314_v18   ;;  %757 = vperm.xlu0 %1189, %v1333_v21  }
  0xea   :  { %v1604_v15 = vpop.permute.xlu1 %359  ;;  %v1606_v14 = vpop.permute.xlu0 %363 }
  0xeb   :  { %2639 = vst [vmem:[#allocation17_spill] sm:$0xff] %v1604_v15  ;;  %2640 = vst [vmem:[#allocation18_spill] sm:$0xff] %v1606_v14 }
  0xed   :  { %745 = vperm.xlu1 %1190, %v1326_v20   ;;  %765 = vperm.xlu0 %1189, %v1345_v23  }
  0xee   :  { %v1610_v17 = vpop.permute.xlu1 %367  ;;  %v1612_v16 = vpop.permute.xlu0 %371 }
  0xef   :  { %2641 = vst [vmem:[#allocation19_spill] sm:$0xff] %v1610_v17  ;;  %2642 = vst [vmem:[#allocation20_spill] sm:$0xff] %v1612_v16 }
  0xf1   :  { %753 = vperm.xlu1 %1190, %v1338_v22   ;;  %773 = vperm.xlu0 %1189, %v1357_v25   ;;  %v1631_v22 = vld [vmem:[%s2610_s1 + $0x1] ss:$0 sm:$0xff] }
  0xf2   :  { %v1616_v19 = vpop.permute.xlu1 %375  ;;  %v1618_v18 = vpop.permute.xlu0 %379 }
  0xf3   :  { %2643 = vst [vmem:[#allocation21_spill] sm:$0xff] %v1616_v19  ;;  %2644 = vst [vmem:[#allocation22_spill] sm:$0xff] %v1618_v18 }
  0xf5   :  { %761 = vperm.xlu1 %1190, %v1350_v24   ;;  %781 = vperm.xlu0 %1189, %v1369_v27  }
  0xf6   :  { %v1622_v21 = vpop.permute.xlu1 %383  ;;  %v1624_v20 = vpop.permute.xlu0 %387 }
  0xf7   :  { %2645 = vst [vmem:[#allocation23_spill] sm:$0xff] %v1622_v21  ;;  %2646 = vst [vmem:[#allocation24_spill] sm:$0xff] %v1624_v20 }
  0xf9   :  { %769 = vperm.xlu1 %1190, %v1362_v26   ;;  %789 = vperm.xlu0 %1189, %v1381_v29  }
  0xfa   :  { %v392_v23 = vpop.permute.xlu1 %391  ;;  %v1633_v25 = vpop.permute.xlu0 %395 }
  0xfb   :  { %2647 = vst [vmem:[#allocation25_spill] sm:$0xff] %v1633_v25  ;;  %v438_v24 = vmul.f32 %v1631_v22, %v392_v23 }
  0xfd   :  { %v1637_v27 = vadd.f32 %v438_v24, %v1532_v62  ;;  %777 = vperm.xlu1 %1190, %v1374_v28   ;;  %797 = vperm.xlu0 %1189, %v1393_v31  }
  0xfe   :  { %v400_v26 = vpop.permute.xlu1 %399  ;;  %v1641_v21 = vpop.permute.xlu0 %403 }
  0xff   :  { %2648 = vst [vmem:[#allocation26_spill] sm:$0xff] %v1641_v21  ;;  %v440_v29 = vmul.f32 %v1631_v22, %v400_v26 }
 0x101   :  { %v1645_v19 = vadd.f32 %v440_v29, %v1540_v58  ;;  %785 = vperm.xlu1 %1190, %v1386_v30  }
 0x103   :  { %v1648_v25 = vpop.permute.xlu1 %476  ;;  %v1650_v23 = vpop.permute.xlu0 %480 }
 0x105   :  { %793 = vperm.xlu1 %1190, %v1398_v32  }
 0x107   :  { %v1653_v62 = vpop.permute.xlu1 %484  ;;  %v1655_v28 = vpop.permute.xlu0 %492 }
 0x10b   :  { %v1657_v31 = vpop.permute.xlu1 %488  ;;  %v1659_v24 = vpop.permute.xlu0 %500 }
 0x10f   :  { %v1661_v26 = vpop.permute.xlu1 %496  ;;  %v1663_v58 = vpop.permute.xlu0 %508 }
 0x113   :  { %v1665_v29 = vpop.permute.xlu1 %504  ;;  %v1667_v30 = vpop.permute.xlu0 %516 }
 0x117   :  { %v1669_v21 = vpop.permute.xlu1 %512  ;;  %v1671_v20 = vpop.permute.xlu0 %524 }
 0x118   :  { %2649 = vst [vmem:[#allocation27_spill] sm:$0xff] %v1671_v20 }
 0x11b   :  { %v1673_v32 = vpop.permute.xlu1 %520  ;;  %v1675_v17 = vpop.permute.xlu0 %532 }
 0x11c   :  { %2650 = vst [vmem:[#allocation28_spill] sm:$0xff] %v1675_v17  ;;  %v211_v17 = vmul.f32 %v1521_v63, %v1434_v34  ;;  %v216_v34 = vmul.f32 %v1521_v63, %v1452_v41  ;;  %v220_v41 = vmul.f32 %v1521_v63, %v1464_v45 }
 0x11f   :  { %v1677_v18 = vpop.permute.xlu1 %528  ;;  %v1679_v15 = vpop.permute.xlu0 %540 }
 0x120   :  { %2651 = vst [vmem:[#allocation29_spill] sm:$0xff] %v1679_v15  ;;  %v209_v15 = vmul.f32 %v1521_v63, %v1436_v35  ;;  %v215_v35 = vmul.f32 %v1521_v63, %v1454_v42  ;;  %v219_v42 = vmul.f32 %v1521_v63, %v1466_v46 }
 0x122   :  { %v1773_v7 = vadd.f32 %v1529_v61, %v219_v42 }
 0x123   :  { %v1681_v16 = vpop.permute.xlu1 %536  ;;  %v1683_v13 = vpop.permute.xlu0 %548 }
 0x124   :  { %2652 = vst [vmem:[#allocation30_spill] sm:$0xff] %v1683_v13  ;;  %v212_v13 = vmul.f32 %v1521_v63, %v1440_v37  ;;  %v1718_v37 = vadd.f32 %v1529_v61, %v211_v17 }
 0x127   :  { %v1685_v14 = vpop.permute.xlu1 %544  ;;  %v1687_v11 = vpop.permute.xlu0 %556 }
 0x128   :  { %2653 = vst [vmem:[#allocation31_spill] sm:$0xff] %v1685_v14  ;;  %2654 = vst [vmem:[#allocation32_spill] sm:$0xff] %v1687_v11  ;;  %v210_v11 = vmul.f32 %v1521_v63, %v1442_v38  ;;  %v245_v38 = vadd.f32 %v1529_v61, %v209_v15 }
 0x12b   :  { %v1689_v12 = vpop.permute.xlu1 %552  ;;  %v1691_v9 = vpop.permute.xlu0 %564 }
 0x12c   :  { %2655 = vst [vmem:[#allocation33_spill] sm:$0xff] %v1689_v12  ;;  %2656 = vst [vmem:[#allocation34_spill] sm:$0xff] %v1691_v9  ;;  %v214_v12 = vmul.f32 %v1521_v63, %v1446_v39  ;;  %v213_v9 = vmul.f32 %v1521_v63, %v1448_v40  ;;  %v218_v39 = vmul.f32 %v1521_v63, %v1458_v43 }
 0x12d   :  { %v217_v40 = vmul.f32 %v1521_v63, %v1460_v44  ;;  %v222_v43 = vmul.f32 %v1521_v63, %v1470_v47  ;;  %v221_v44 = vmul.f32 %v1521_v63, %v1472_v48  ;;  %v224_v47 = vmul.f32 %v1521_v63, %v1476_v49 }
 0x12e   :  { %v1734_v17 = vadd.f32 %v1529_v61, %v214_v12  ;;  %v1737_v15 = vadd.f32 %v1529_v61, %v213_v9  ;;  %v1754_v9 = vadd.f32 %v1529_v61, %v215_v35  ;;  %v1760_v48 = vadd.f32 %v1529_v61, %v218_v39 }
 0x12f   :  { %v1693_v20 = vpop.permute.xlu1 %560  ;;  %v1695_v10 = vpop.permute.xlu0 %572  ;;  %v1763_v14 = vadd.f32 %v1529_v61, %v217_v40  ;;  %v1770_v35 = vadd.f32 %v1529_v61, %v220_v41  ;;  %v225_v49 = vmul.f32 %v1521_v63, %v1484_v52  ;;  %v1781_v40 = vadd.f32 %v1529_v61, %v222_v43 }
 0x130   :  { %2657 = vst [vmem:[#allocation35_spill] sm:$0xff] %v1693_v20  ;;  %2658 = vst [vmem:[#allocation36_spill] sm:$0xff] %v1695_v10  ;;  %v410_v41 = vmul.f32 %v1631_v22, %v1546_v57  ;;  %v1793_v52 = vadd.f32 %v1529_v61, %v224_v47  ;;  %v230_v43 = vmul.f32 %v1521_v63, %v1494_v55 }
 0x131   :  { %v229_v57 = vmul.f32 %v1521_v63, %v1496_v56 }
 0x133   :  { %v1709_v20 = vpop.permute.xlu1 %568  ;;  %v1711_v10 = vpop.permute.xlu0 %580 }
 0x134   :  { %2659 = vst [vmem:[#allocation37_spill] sm:$0xff] %v1709_v20  ;;  %2660 = vst [vmem:[#allocation38_spill] sm:$0xff] %v1711_v10  ;;  %v248_v20 = vadd.f32 %v1529_v61, %v212_v13  ;;  %v1727_v10 = vadd.f32 %v1529_v61, %v210_v11  ;;  %v1746_v11 = vld [vmem:[%s2610_s1 + $0x2] ss:$0 sm:$0xff]  ;;  %v1751_v13 = vadd.f32 %v1529_v61, %v216_v34 }
 0x135   :  { %v226_v34 = vmul.f32 %v1521_v63, %v1482_v51  ;;  %v228_v51 = vmul.f32 %v1521_v63, %v1488_v53  ;;  %v607_v47 = vmul.f32 %v1746_v11, %v1648_v25  ;;  %v2671_v25 = vld [vmem:[#allocation4_spill] sm:$0xff] }
 0x137   :  { %v1748_v45 = vpop.permute.xlu1 %576  ;;  %v589_v46 = vpop.permute.xlu0 %588  ;;  %v1804_v53 = vadd.f32 %v1529_v61, %v226_v34  ;;  %v1823_v34 = vld [vmem:[%s2610_s1 + $0x3] ss:$0 sm:$0xff]  ;;  %v1826_v56 = vadd.f32 %v1529_v61, %v228_v51 }
 0x138   :  { %2661 = vst [vmem:[#allocation39_spill] sm:$0xff] %v1748_v45  ;;  %v635_v12 = vmul.f32 %v1746_v11, %v589_v46  ;;  %v223_v45 = vmul.f32 %v1521_v63, %v1478_v50  ;;  %v1784_v50 = vadd.f32 %v1529_v61, %v221_v44  ;;  %v2675_v51 = vld [vmem:[#allocation6_spill] sm:$0xff] }
 0x139   :  { %2665 = vst [vmem:[#allocation43_spill] sm:$0xff] %v1804_v53 }
 0x13a   :  { %v1778_v39 = vadd.f32 %v635_v12, %v1637_v27  ;;  %v227_v27 = vmul.f32 %v1521_v63, %v1490_v54  ;;  %v1801_v12 = vadd.f32 %v1529_v61, %v223_v45  ;;  %v2667_v54 = vld [vmem:[#allocation2_spill] sm:$0xff] }
 0x13b   :  { %v1790_v42 = vpop.permute.xlu1 %584  ;;  %v597_v46 = vpop.permute.xlu0 %596  ;;  %v232_v55 = vmul.f32 %v1521_v63, %v2667_v54  ;;  %v413_v54 = vmul.f32 %v1631_v22, %v1552_v59  ;;  %v610_v59 = vmul.f32 %v1746_v11, %v1657_v31  ;;  %v415_v31 = vmul.f32 %v1631_v22, %v1558_v2  ;;  %v1882_v2 = vld [vmem:[%s2610_s1 + $0x8] ss:$0 sm:$0xff] }
 0x13c   :  { %2662 = vst [vmem:[#allocation40_spill] sm:$0xff] %v1778_v39  ;;  %2663 = vst [vmem:[#allocation41_spill] sm:$0xff] %v1790_v42  ;;  %v637_v44 = vmul.f32 %v1746_v11, %v597_v46  ;;  %v1811_v39 = vadd.f32 %v1529_v61, %v225_v49  ;;  %v2668_v42 = vld [vmem:[#allocation3_spill] sm:$0xff]  ;;  %v234_v49 = vmul.f32 %v1521_v63, %v2671_v25 }
 0x13d   :  { %2664 = vst [vmem:[#allocation42_spill] sm:$0xff] %v1801_v12  ;;  %v231_v46 = vmul.f32 %v1521_v63, %v2668_v42  ;;  %2670 = vst [vmem:[#allocation3_spill] sm:$0xff] %v1826_v56  ;;  %v1838_v42 = vadd.f32 %v1529_v61, %v230_v43  ;;  %v236_v56 = vmul.f32 %v1521_v63, %v2675_v51  ;;  %v2677_v51 = vld [vmem:[#allocation10_spill] sm:$0xff] }
 0x13e   :  { %2666 = vst [vmem:[#allocation44_spill] sm:$0xff] %v1811_v39  ;;  %v1818_v45 = vadd.f32 %v637_v44, %v1645_v19  ;;  %v442_v39 = vadd.f32 %v410_v41, %v245_v38  ;;  %v1835_v19 = vadd.f32 %v1529_v61, %v227_v27  ;;  %v2674_v44 = vld [vmem:[#allocation5_spill] sm:$0xff]  ;;  %v1845_v38 = vadd.f32 %v1529_v61, %v229_v57 }
 0x13f   :  { %v1832_v12 = vpop.permute.xlu1 %592  ;;  %v1851_v25 = vadd.f32 %v1529_v61, %v232_v55  ;;  %v1854_v43 = vadd.f32 %v1529_v61, %v231_v46  ;;  %v1861_v57 = vadd.f32 %v1529_v61, %v234_v49  ;;  %v1873_v46 = vadd.f32 %v1529_v61, %v236_v56 }
 0x140   :  { %2669 = vst [vmem:[#allocation2_spill] sm:$0xff] %v1818_v45  ;;  %2672 = vst [vmem:[#allocation4_spill] sm:$0xff] %v1832_v12  ;;  %v233_v45 = vmul.f32 %v1521_v63, %v2674_v44  ;;  %v674_v53 = vpop.permute.xlu0 %673  ;;  %v639_v41 = vadd.f32 %v607_v47, %v442_v39  ;;  %v2676_v44 = vld [vmem:[#allocation7_spill] sm:$0xff]  ;;  %v445_v39 = vadd.f32 %v413_v54, %v248_v20 }
 0x141   :  { %2673 = vst [vmem:[#allocation45_spill] sm:$0xff] %v1835_v19  ;;  %v804_v27 = vmul.f32 %v1823_v34, %v674_v53  ;;  %v235_v12 = vmul.f32 %v1521_v63, %v2676_v44  ;;  %v411_v19 = vmul.f32 %v1631_v22, %v2677_v51  ;;  %v2680_v44 = vld [vmem:[#allocation8_spill] sm:$0xff]  ;;  %v608_v49 = vmul.f32 %v1746_v11, %v1650_v23 }
 0x142   :  { %v1870_v55 = vadd.f32 %v1529_v61, %v233_v45  ;;  %v238_v51 = vmul.f32 %v1521_v63, %v2680_v44  ;;  %v642_v54 = vadd.f32 %v610_v59, %v445_v39  ;;  %v612_v45 = vmul.f32 %v1746_v11, %v1661_v26 }
 0x143   :  { %v1865_v53 = vadd.f32 %v804_v27, %v639_v41  ;;  %v1867_v47 = vpop.permute.xlu1 %600  ;;  %v1889_v27 = vadd.f32 %v1529_v61, %v235_v12  ;;  %v443_v44 = vadd.f32 %v411_v19, %v1727_v10  ;;  %v412_v23 = vmul.f32 %v1631_v22, %v1550_v60 }
 0x144   :  { %2678 = vst [vmem:[#allocation5_spill] sm:$0xff] %v1867_v47  ;;  %2679 = vst [vmem:[#allocation6_spill] sm:$0xff] %v1870_v55  ;;  %v686_v20 = vpop.permute.xlu0 %685  ;;  %v417_v47 = vmul.f32 %v1631_v22, %v1564_v3  ;;  %v2681_v55 = vld [vmem:[#allocation9_spill] sm:$0xff]  ;;  %v447_v26 = vadd.f32 %v415_v31, %v1734_v17  ;;  %v609_v60 = vmul.f32 %v1746_v11, %v1653_v62 }
 0x145   :  { %v868_v41 = vmax.f32 %v1865_v53, 0.0  ;;  %v807_v56 = vmul.f32 %v1823_v34, %v686_v20  ;;  %v240_v59 = vmul.f32 %v1521_v63, %v2681_v55  ;;  %v1905_v20 = vadd.f32 %v1529_v61, %v238_v51 }
 0x146   :  { %v640_v10 = vadd.f32 %v608_v49, %v443_v44  ;;  %v614_v3 = vmul.f32 %v1746_v11, %v1665_v29  ;;  %v644_v55 = vadd.f32 %v612_v45, %v447_v26  ;;  %v444_v51 = vadd.f32 %v412_v23, %v1718_v37 }
 0x147   :  { %v1899_v39 = vadd.f32 %v807_v56, %v642_v54  ;;  %v905_v12 = vmul.f32 %v1882_v2, %v868_v41  ;;  %v414_v49 = vmul.f32 %v1631_v22, %v1556_v0  ;;  %v449_v62 = vadd.f32 %v417_v47, %v1751_v13 }
 0x148   :  { %v678_v19 = vpop.permute.xlu1 %677  ;;  %v694_v63 = vpop.permute.xlu0 %693  ;;  %v419_v29 = vmul.f32 %v1631_v22, %v1570_v4  ;;  %v1921_v56 = vadd.f32 %v1529_v61, %v240_v59  ;;  %v641_v37 = vadd.f32 %v609_v60, %v444_v51  ;;  %v611_v0 = vmul.f32 %v1746_v11, %v1655_v28 }
 0x149   :  { %v871_v17 = vmax.f32 %v1899_v39, 0.0  ;;  %v805_v31 = vmul.f32 %v1823_v34, %v678_v19  ;;  %v809_v54 = vmul.f32 %v1823_v34, %v694_v63  ;;  %937 = vadd.xlane.f32.xlu1 %v905_v12  ;;  %v646_v23 = vadd.f32 %v614_v3, %v449_v62 }
 0x14a   :  { %v616_v13 = vmul.f32 %v1746_v11, %v1669_v21  ;;  %v446_v60 = vadd.f32 %v414_v49, %v1737_v15  ;;  %v416_v28 = vmul.f32 %v1631_v22, %v1562_v36  ;;  %v451_v3 = vadd.f32 %v419_v29, %v1760_v48 }
 0x14b   :  { %v1923_v45 = vadd.f32 %v805_v31, %v640_v10  ;;  %v1925_v44 = vadd.f32 %v809_v54, %v644_v55  ;;  %v908_v26 = vmul.f32 %v1882_v2, %v871_v17  ;;  %v421_v21 = vmul.f32 %v1631_v22, %v1576_v1 }
 0x14c   :  { %v682_v4 = vpop.permute.xlu1 %681  ;;  %v702_v47 = vpop.permute.xlu0 %701  ;;  %v643_v31 = vadd.f32 %v611_v0, %v446_v60  ;;  %v613_v36 = vmul.f32 %v1746_v11, %v1659_v24  ;;  %v648_v48 = vadd.f32 %v616_v13, %v451_v3  ;;  %v618_v1 = vmul.f32 %v1746_v11, %v1673_v32 }
 0x14d   :  { %v869_v61 = vmax.f32 %v1923_v45, 0.0  ;;  %v873_v59 = vmax.f32 %v1925_v44, 0.0  ;;  %v806_v12 = vmul.f32 %v1823_v34, %v682_v4  ;;  %v811_v10 = vmul.f32 %v1823_v34, %v702_v47  ;;  %943 = vadd.xlane.f32.xlu1 %v908_v26 }
 0x14e   :  { %v418_v24 = vmul.f32 %v1631_v22, %v1568_v33  ;;  %v453_v0 = vadd.f32 %v421_v21, %v1770_v35  ;;  %v423_v32 = vmul.f32 %v1631_v22, %v1582_v6  ;;  %v615_v33 = vmul.f32 %v1746_v11, %v1663_v58 }
 0x14f   :  { %v1944_v19 = vadd.f32 %v806_v12, %v641_v37  ;;  %v1946_v63 = vadd.f32 %v811_v10, %v646_v23  ;;  %v906_v55 = vmul.f32 %v1882_v2, %v869_v61  ;;  %v910_v15 = vmul.f32 %v1882_v2, %v873_v59 }
 0x150   :  { %v690_v54 = vpop.permute.xlu1 %689  ;;  %v710_v51 = vpop.permute.xlu0 %709  ;;  %v448_v37 = vadd.f32 %v416_v28, %v1754_v9  ;;  %v650_v35 = vadd.f32 %v618_v1, %v453_v0  ;;  %v620_v6 = vmul.f32 %v1746_v11, %v1677_v18  ;;  %v420_v58 = vmul.f32 %v1631_v22, %v1574_v5 }
 0x151   :  { %v870_v49 = vmax.f32 %v1944_v19, 0.0  ;;  %v875_v62 = vmax.f32 %v1946_v63, 0.0  ;;  %v808_v29 = vmul.f32 %v1823_v34, %v690_v54  ;;  %v813_v26 = vmul.f32 %v1823_v34, %v710_v51  ;;  %939 = vadd.xlane.f32.xlu0 %v906_v55  ;;  %947 = vadd.xlane.f32.xlu1 %v910_v15 }
 0x152   :  { %v645_v47 = vadd.f32 %v613_v36, %v448_v37  ;;  %v450_v55 = vadd.f32 %v418_v24, %v1763_v14  ;;  %v455_v15 = vadd.f32 %v423_v32, %v1781_v40  ;;  %v425_v18 = vmul.f32 %v1631_v22, %v1588_v8  ;;  %v2682_v32 = vld [vmem:[#allocation11_spill] sm:$0xff] }
 0x153   :  { %v1968_v23 = vadd.f32 %v808_v29, %v643_v31  ;;  %v1970_v13 = vadd.f32 %v813_v26, %v648_v48  ;;  %v907_v4 = vmul.f32 %v1882_v2, %v870_v49  ;;  %v912_v9 = vmul.f32 %v1882_v2, %v875_v62 }
 0x154   :  { %v698_v12 = vpop.permute.xlu1 %697  ;;  %v718_v10 = vpop.permute.xlu0 %717  ;;  %v647_v1 = vadd.f32 %v615_v33, %v450_v55  ;;  %v617_v5 = vmul.f32 %v1746_v11, %v1667_v30  ;;  %v652_v40 = vadd.f32 %v620_v6, %v455_v15  ;;  %v622_v8 = vmul.f32 %v1746_v11, %v1681_v16  ;;  %v2683_v16 = vld [vmem:[#allocation14_spill] sm:$0xff] }
 0x155   :  { %v872_v60 = vmax.f32 %v1968_v23, 0.0  ;;  %v877_v28 = vmax.f32 %v1970_v13, 0.0  ;;  %v810_v3 = vmul.f32 %v1823_v34, %v698_v12  ;;  %v815_v21 = vmul.f32 %v1823_v34, %v718_v10  ;;  %941 = vadd.xlane.f32.xlu0 %v907_v4  ;;  %951 = vadd.xlane.f32.xlu1 %v912_v9  ;;  %v2684_v12 = vld [vmem:[#allocation27_spill] sm:$0xff] }
 0x156   :  { %v452_v0 = vadd.f32 %v420_v58, %v1773_v7  ;;  %v422_v30 = vmul.f32 %v1631_v22, %v2682_v32  ;;  %v457_v4 = vadd.f32 %v425_v18, %v1793_v52  ;;  %v427_v9 = vmul.f32 %v1631_v22, %v2683_v16 }
 0x157   :  { %v1992_v31 = vadd.f32 %v810_v3, %v645_v47  ;;  %v1994_v36 = vadd.f32 %v815_v21, %v650_v35  ;;  %v909_v48 = vmul.f32 %v1882_v2, %v872_v60  ;;  %v914_v14 = vmul.f32 %v1882_v2, %v877_v28  ;;  %v2685_v3 = vld [vmem:[#allocation31_spill] sm:$0xff] }
 0x158   :  { %v706_v54 = vpop.permute.xlu1 %705  ;;  %v726_v51 = vpop.permute.xlu0 %725  ;;  %v649_v6 = vadd.f32 %v617_v5, %v452_v0  ;;  %v619_v10 = vmul.f32 %v1746_v11, %v2684_v12  ;;  %v654_v52 = vadd.f32 %v622_v8, %v457_v4  ;;  %v624_v21 = vmul.f32 %v1746_v11, %v2685_v3  ;;  %v2686_v5 = vld [vmem:[#allocation12_spill] sm:$0xff]  ;;  %v2687_v8 = vld [vmem:[#allocation43_spill] sm:$0xff] }
 0x159   :  { %v874_v29 = vmax.f32 %v1992_v31, 0.0  ;;  %v879_v26 = vmax.f32 %v1994_v36, 0.0  ;;  %v812_v37 = vmul.f32 %v1823_v34, %v706_v54  ;;  %v817_v24 = vmul.f32 %v1823_v34, %v726_v51  ;;  %945 = vadd.xlane.f32.xlu0 %v909_v48  ;;  %955 = vadd.xlane.f32.xlu1 %v914_v14  ;;  %v2688_v51 = vld [vmem:[#allocation16_spill] sm:$0xff] }
 0x15a   :  { %v459_v54 = vadd.f32 %v427_v9, %v2687_v8  ;;  %v2689_v4 = vld [vmem:[#allocation28_spill] sm:$0xff]  ;;  %v2694_v8 = vld [vmem:[#allocation18_spill] sm:$0xff] }
 0x15b   :  { %v2016_v47 = vadd.f32 %v812_v37, %v647_v1  ;;  %v2018_v33 = vadd.f32 %v817_v24, %v652_v40  ;;  %v911_v35 = vmul.f32 %v1882_v2, %v874_v29  ;;  %v916_v7 = vmul.f32 %v1882_v2, %v879_v26 }
 0x15c   :  { %v714_v55 = vpop.permute.xlu1 %713  ;;  %v734_v58 = vpop.permute.xlu0 %733  ;;  %v454_v1 = vadd.f32 %v422_v30, %v1784_v50  ;;  %v424_v40 = vmul.f32 %v1631_v22, %v2686_v5  ;;  %v429_v37 = vmul.f32 %v1631_v22, %v2688_v51  ;;  %v621_v16 = vmul.f32 %v1746_v11, %v2689_v4 }
 0x15d   :  { %v2623_v15 = vmax.f32 %v2016_v47, 0.0  ;;  %v2616_v18 = vmax.f32 %v2018_v33, 0.0  ;;  %v814_v48 = vmul.f32 %v1823_v34, %v714_v55  ;;  %v819_v14 = vmul.f32 %v1823_v34, %v734_v58  ;;  %949 = vadd.xlane.f32.xlu0 %v911_v35  ;;  %959 = vadd.xlane.f32.xlu1 %v916_v7  ;;  %v2690_v35 = vld [vmem:[#allocation33_spill] sm:$0xff] }
 0x15e   :  { %v651_v30 = vadd.f32 %v619_v10, %v454_v1  ;;  %v656_v9 = vadd.f32 %v624_v21, %v459_v54  ;;  %v626_v7 = vmul.f32 %v1746_v11, %v2690_v35  ;;  %v2691_v10 = vld [vmem:[#allocation42_spill] sm:$0xff]  ;;  %v2693_v1 = vld [vmem:[#allocation3_spill] sm:$0xff]  ;;  %v431_v54 = vmul.f32 %v1631_v22, %v2694_v8 }
 0x15f   :  { %v2040_v24 = vadd.f32 %v814_v48, %v649_v6  ;;  %v2042_v0 = vadd.f32 %v819_v14, %v654_v52  ;;  %v913_v32 = vmul.f32 %v1882_v2, %v2623_v15  ;;  %v918_v50 = vmul.f32 %v1882_v2, %v2616_v18  ;;  %v2692_v14 = vld [vmem:[#allocation13_spill] sm:$0xff]  ;;  %v2698_v8 = vld [vmem:[#allocation15_spill] sm:$0xff] }
 0x160   :  { %v722_v6 = vpop.permute.xlu1 %721  ;;  %v742_v12 = vpop.permute.xlu0 %741  ;;  %v456_v48 = vadd.f32 %v424_v40, %v2691_v10  ;;  %v426_v21 = vmul.f32 %v1631_v22, %v2692_v14  ;;  %v461_v5 = vadd.f32 %v429_v37, %v2693_v1  ;;  %v2723_v63 = vmax.f32 %v2018_v33, 0.0 }
 0x161   :  { %v2613_v52 = vmax.f32 %v2040_v24, 0.0  ;;  %v2612_v3 = vmax.f32 %v2042_v0, 0.0  ;;  %v816_v55 = vmul.f32 %v1823_v34, %v722_v6  ;;  %v821_v58 = vmul.f32 %v1823_v34, %v742_v12  ;;  %953 = vadd.xlane.f32.xlu0 %v913_v32  ;;  %963 = vadd.xlane.f32.xlu1 %v918_v50  ;;  %v2695_v50 = vld [vmem:[#allocation29_spill] sm:$0xff]  ;;  %v2696_v12 = vld [vmem:[#allocation35_spill] sm:$0xff] }
 0x162   :  { %v653_v32 = vadd.f32 %v621_v16, %v456_v48  ;;  %v623_v6 = vmul.f32 %v1746_v11, %v2695_v50  ;;  %v658_v37 = vadd.f32 %v626_v7, %v461_v5  ;;  %v628_v10 = vmul.f32 %v1746_v11, %v2696_v12  ;;  %v2697_v16 = vld [vmem:[#allocation44_spill] sm:$0xff] }
 0x163   :  { %v2064_v51 = vadd.f32 %v816_v55, %v651_v30  ;;  %v2066_v4 = vadd.f32 %v821_v58, %v656_v9  ;;  %v915_v35 = vmul.f32 %v1882_v2, %v2613_v52  ;;  %v920_v40 = vmul.f32 %v1882_v2, %v2612_v3  ;;  %v2699_v50 = vld [vmem:[#allocation20_spill] sm:$0xff] }
 0x164   :  { %v730_v30 = vpop.permute.xlu1 %729  ;;  %v750_v55 = vpop.permute.xlu0 %749  ;;  %v458_v48 = vadd.f32 %v426_v21, %v2697_v16  ;;  %v428_v7 = vmul.f32 %v1631_v22, %v2698_v8  ;;  %v463_v5 = vadd.f32 %v431_v54, %v1838_v42  ;;  %v433_v12 = vmul.f32 %v1631_v22, %v2699_v50  ;;  %v2701_v54 = vld [vmem:[#allocation37_spill] sm:$0xff] }
 0x165   :  { %v2615_v9 = vmax.f32 %v2064_v51, 0.0  ;;  %v2614_v58 = vmax.f32 %v2066_v4, 0.0  ;;  %v818_v14 = vmul.f32 %v1823_v34, %v730_v30  ;;  %v823_v1 = vmul.f32 %v1823_v34, %v750_v55  ;;  %957 = vadd.xlane.f32.xlu0 %v915_v35  ;;  %967 = vadd.xlane.f32.xlu1 %v920_v40  ;;  %v2700_v40 = vld [vmem:[#allocation30_spill] sm:$0xff] }
 0x166   :  { %v655_v35 = vadd.f32 %v623_v6, %v458_v48  ;;  %v625_v55 = vmul.f32 %v1746_v11, %v2700_v40  ;;  %v660_v42 = vadd.f32 %v628_v10, %v463_v5  ;;  %v630_v16 = vmul.f32 %v1746_v11, %v2701_v54  ;;  %v2702_v6 = vld [vmem:[#allocation45_spill] sm:$0xff]  ;;  %v2704_v40 = vld [vmem:[#allocation22_spill] sm:$0xff] }
 0x167   :  { %v2088_v3 = vadd.f32 %v818_v14, %v653_v32  ;;  %v2090_v52 = vadd.f32 %v823_v1, %v658_v37  ;;  %v917_v30 = vmul.f32 %v1882_v2, %v2615_v9  ;;  %v922_v21 = vmul.f32 %v1882_v2, %v2614_v58  ;;  %v2703_v58 = vld [vmem:[#allocation17_spill] sm:$0xff] }
 0x168   :  { %v738_v32 = vpop.permute.xlu1 %737  ;;  %v758_v14 = vpop.permute.xlu0 %757  ;;  %v460_v48 = vadd.f32 %v428_v7, %v2702_v6  ;;  %v430_v10 = vmul.f32 %v1631_v22, %v2703_v58  ;;  %v465_v5 = vadd.f32 %v433_v12, %v1851_v25  ;;  %v435_v54 = vmul.f32 %v1631_v22, %v2704_v40  ;;  %v2706_v12 = vld [vmem:[#allocation39_spill] sm:$0xff] }
 0x169   :  { %v2618_v37 = vmax.f32 %v2088_v3, 0.0  ;;  %v2617_v1 = vmax.f32 %v2090_v52, 0.0  ;;  %v820_v8 = vmul.f32 %v1823_v34, %v738_v32  ;;  %v825_v50 = vmul.f32 %v1823_v34, %v758_v14  ;;  %961 = vadd.xlane.f32.xlu0 %v917_v30  ;;  %971 = vadd.xlane.f32.xlu1 %v922_v21  ;;  %v2705_v21 = vld [vmem:[#allocation32_spill] sm:$0xff] }
 0x16a   :  { %v657_v30 = vadd.f32 %v625_v55, %v460_v48  ;;  %v627_v58 = vmul.f32 %v1746_v11, %v2705_v21  ;;  %v662_v25 = vadd.f32 %v630_v16, %v465_v5  ;;  %v632_v14 = vmul.f32 %v1746_v11, %v2706_v12  ;;  %v2707_v48 = vld [vmem:[#allocation19_spill] sm:$0xff]  ;;  %v2708_v21 = vld [vmem:[#allocation24_spill] sm:$0xff] }
 0x16b   :  { %v2112_v9 = vadd.f32 %v820_v8, %v655_v35  ;;  %v2114_v18 = vadd.f32 %v825_v50, %v660_v42  ;;  %v919_v32 = vmul.f32 %v1882_v2, %v2618_v37  ;;  %v924_v7 = vmul.f32 %v1882_v2, %v2617_v1 }
 0x16c   :  { %v746_v35 = vpop.permute.xlu1 %745  ;;  %v766_v8 = vpop.permute.xlu0 %765  ;;  %v462_v55 = vadd.f32 %v430_v10, %v1845_v38  ;;  %v432_v16 = vmul.f32 %v1631_v22, %v2707_v48  ;;  %v467_v5 = vadd.f32 %v435_v54, %v1861_v57  ;;  %v437_v12 = vmul.f32 %v1631_v22, %v2708_v21  ;;  %v2710_v54 = vld [vmem:[#allocation41_spill] sm:$0xff] }
 0x16d   :  { %v2620_v42 = vmax.f32 %v2112_v9, 0.0  ;;  %v2619_v50 = vmax.f32 %v2114_v18, 0.0  ;;  %v822_v6 = vmul.f32 %v1823_v34, %v746_v35  ;;  %v827_v40 = vmul.f32 %v1823_v34, %v766_v8  ;;  %965 = vadd.xlane.f32.xlu0 %v919_v32  ;;  %975 = vadd.xlane.f32.xlu1 %v924_v7  ;;  %v2709_v32 = vld [vmem:[#allocation34_spill] sm:$0xff] }
 0x16e   :  { %v659_v10 = vadd.f32 %v627_v58, %v462_v55  ;;  %v629_v7 = vmul.f32 %v1746_v11, %v2709_v32  ;;  %v664_v57 = vadd.f32 %v632_v14, %v467_v5  ;;  %v634_v8 = vmul.f32 %v1746_v11, %v2710_v54  ;;  %v2711_v55 = vld [vmem:[#allocation21_spill] sm:$0xff] }
 0x16f   :  { %v2136_v1 = vadd.f32 %v822_v6, %v657_v30  ;;  %v2138_v37 = vadd.f32 %v827_v40, %v662_v25  ;;  %v921_v35 = vmul.f32 %v1882_v2, %v2620_v42  ;;  %v926_v38 = vmul.f32 %v1882_v2, %v2619_v50  ;;  %v2712_v32 = vld [vmem:[#allocation25_spill] sm:$0xff] }
 0x170   :  { %v754_v30 = vpop.permute.xlu1 %753  ;;  %v774_v6 = vpop.permute.xlu0 %773  ;;  %v464_v58 = vadd.f32 %v432_v16, %v1854_v43  ;;  %v434_v14 = vmul.f32 %v1631_v22, %v2711_v55  ;;  %v469_v5 = vadd.f32 %v437_v12, %v1873_v46  ;;  %v439_v54 = vmul.f32 %v1631_v22, %v2712_v32  ;;  %v2714_v12 = vld [vmem:[#allocation4_spill] sm:$0xff] }
 0x171   :  { %v2622_v25 = vmax.f32 %v2136_v1, 0.0  ;;  %v2621_v40 = vmax.f32 %v2138_v37, 0.0  ;;  %v824_v48 = vmul.f32 %v1823_v34, %v754_v30  ;;  %v829_v21 = vmul.f32 %v1823_v34, %v774_v6  ;;  %969 = vadd.xlane.f32.xlu0 %v921_v35  ;;  %979 = vadd.xlane.f32.xlu1 %v926_v38  ;;  %v2713_v35 = vld [vmem:[#allocation36_spill] sm:$0xff] }
 0x172   :  { %v661_v16 = vadd.f32 %v629_v7, %v464_v58  ;;  %v631_v38 = vmul.f32 %v1746_v11, %v2713_v35  ;;  %v666_v46 = vadd.f32 %v634_v8, %v469_v5  ;;  %v636_v6 = vmul.f32 %v1746_v11, %v2714_v12  ;;  %v2715_v7 = vld [vmem:[#allocation6_spill] sm:$0xff] }
 0x173   :  { %v2160_v50 = vadd.f32 %v824_v48, %v659_v10  ;;  %v2162_v42 = vadd.f32 %v829_v21, %v664_v57  ;;  %v923_v30 = vmul.f32 %v1882_v2, %v2622_v25  ;;  %v928_v43 = vmul.f32 %v1882_v2, %v2621_v40  ;;  %v2716_v40 = vld [vmem:[#allocation23_spill] sm:$0xff]  ;;  %v2717_v35 = vld [vmem:[#allocation26_spill] sm:$0xff] }
 0x174   :  { %v762_v10 = vpop.permute.xlu1 %761  ;;  %v782_v48 = vpop.permute.xlu0 %781  ;;  %v466_v58 = vadd.f32 %v434_v14, %v2715_v7  ;;  %v436_v8 = vmul.f32 %v1631_v22, %v2716_v40  ;;  %v471_v5 = vadd.f32 %v439_v54, %v1905_v20  ;;  %v441_v12 = vmul.f32 %v1631_v22, %v2717_v35  ;;  %v2719_v54 = vld [vmem:[#allocation5_spill] sm:$0xff] }
 0x175   :  { %v888_v57 = vmax.f32 %v2160_v50, 0.0  ;;  %v893_v21 = vmax.f32 %v2162_v42, 0.0  ;;  %v826_v55 = vmul.f32 %v1823_v34, %v762_v10  ;;  %v831_v32 = vmul.f32 %v1823_v34, %v782_v48  ;;  %973 = vadd.xlane.f32.xlu0 %v923_v30  ;;  %983 = vadd.xlane.f32.xlu1 %v928_v43  ;;  %v2718_v43 = vld [vmem:[#allocation38_spill] sm:$0xff] }
 0x176   :  { %v663_v30 = vadd.f32 %v631_v38, %v466_v58  ;;  %v633_v40 = vmul.f32 %v1746_v11, %v2718_v43  ;;  %v668_v20 = vadd.f32 %v636_v6, %v471_v5  ;;  %v638_v22 = vmul.f32 %v1746_v11, %v2719_v54 }
 0x177   :  { %v2184_v25 = vadd.f32 %v826_v55, %v661_v16  ;;  %v2186_v15 = vadd.f32 %v831_v32, %v666_v46  ;;  %v925_v10 = vmul.f32 %v1882_v2, %v888_v57  ;;  %v930_v14 = vmul.f32 %v1882_v2, %v893_v21 }
 0x178   :  { %v770_v16 = vpop.permute.xlu1 %769  ;;  %v790_v48 = vpop.permute.xlu0 %789  ;;  %v468_v38 = vadd.f32 %v436_v8, %v1889_v27  ;;  %v473_v58 = vadd.f32 %v441_v12, %v1921_v56  ;;  %v2725_v13 = vmax.f32 %v2042_v0, 0.0  ;;  %v2727_v36 = vmax.f32 %v2066_v4, 0.0 }
 0x179   :  { %v890_v46 = vmax.f32 %v2184_v25, 0.0  ;;  %v895_v55 = vmax.f32 %v2186_v15, 0.0  ;;  %v828_v32 = vmul.f32 %v1823_v34, %v770_v16  ;;  %v833_v7 = vmul.f32 %v1823_v34, %v790_v48  ;;  %977 = vadd.xlane.f32.xlu0 %v925_v10  ;;  %987 = vadd.xlane.f32.xlu1 %v930_v14 }
 0x17a   :  { %v665_v43 = vadd.f32 %v633_v40, %v468_v38  ;;  %v670_v54 = vadd.f32 %v638_v22, %v473_v58  ;;  %v2720_v38 = vld [vmem:[#allocation40_spill] sm:$0xff]  ;;  %v2729_v33 = vmax.f32 %v2090_v52, 0.0  ;;  %v2730_v0 = vmax.f32 %v2112_v9, 0.0 }
 0x17b   :  { %v2204_v6 = vadd.f32 %v828_v32, %v663_v30  ;;  %v2206_v5 = vadd.f32 %v833_v7, %v668_v20  ;;  %v927_v11 = vmul.f32 %v1882_v2, %v890_v46  ;;  %v932_v35 = vmul.f32 %v1882_v2, %v895_v55 }
 0x17c   :  { %v778_v10 = vpop.permute.xlu1 %777  ;;  %v798_v14 = vpop.permute.xlu0 %797  ;;  %v2731_v4 = vmax.f32 %v2114_v18, 0.0  ;;  %v2733_v52 = vmax.f32 %v2138_v37, 0.0 }
 0x17d   :  { %v892_v27 = vmax.f32 %v2204_v6, 0.0  ;;  %v897_v56 = vmax.f32 %v2206_v5, 0.0  ;;  %v830_v8 = vmul.f32 %v1823_v34, %v778_v10  ;;  %v835_v12 = vmul.f32 %v1823_v34, %v798_v14  ;;  %981 = vadd.xlane.f32.xlu0 %v927_v11  ;;  %991 = vadd.xlane.f32.xlu1 %v932_v35  ;;  %v2245_v14 = vld [vmem:[%s2610_s1 + $0x9] ss:$0 sm:$0xff] }
 0x17e   :  { %v1039_v45 = vmul.f32 %v2245_v14, %v868_v41  ;;  %v1046_v39 = vmul.f32 %v2245_v14, %v875_v62  ;;  %v1043_v53 = vmul.f32 %v2245_v14, %v872_v60  ;;  %v1048_v41 = vmul.f32 %v2245_v14, %v877_v28 }
 0x17f   :  { %v2218_v30 = vadd.f32 %v830_v8, %v665_v43  ;;  %v2220_v20 = vadd.f32 %v835_v12, %v670_v54  ;;  %v929_v40 = vmul.f32 %v1882_v2, %v892_v27  ;;  %v934_v22 = vmul.f32 %v1882_v2, %v897_v56  ;;  %v2721_v8 = vld [vmem:[#allocation2_spill] sm:$0xff] }
 0x180   :  { %v786_v16 = vpop.permute.xlu1 %785  ;;  %v1050_v44 = vmul.f32 %v2245_v14, %v879_v26  ;;  %v2724_v62 = vmax.f32 %v2040_v24, 0.0  ;;  %v1054_v60 = vmul.f32 %v2245_v14, %v2725_v13  ;;  %v2726_v28 = vmax.f32 %v2064_v51, 0.0 }
 0x181   :  { %v894_v48 = vmax.f32 %v2218_v30, 0.0  ;;  %v899_v32 = vmax.f32 %v2220_v20, 0.0  ;;  %v832_v7 = vmul.f32 %v1823_v34, %v786_v16  ;;  %985 = vadd.xlane.f32.xlu0 %v929_v40  ;;  %995 = vadd.xlane.f32.xlu1 %v934_v22  ;;  %v1040_v22 = vmul.f32 %v2245_v14, %v869_v61 }
 0x182   :  { %v1044_v61 = vmul.f32 %v2245_v14, %v873_v59  ;;  %v2722_v59 = vmax.f32 %v2016_v47, 0.0  ;;  %v1049_v23 = vmul.f32 %v2245_v14, %v2724_v62  ;;  %v1051_v31 = vmul.f32 %v2245_v14, %v2726_v28 }
 0x183   :  { %v2232_v58 = vadd.f32 %v832_v7, %v2720_v38  ;;  %v931_v11 = vmul.f32 %v1882_v2, %v894_v48  ;;  %v936_v35 = vmul.f32 %v1882_v2, %v899_v32  ;;  %v1042_v7 = vmul.f32 %v2245_v14, %v871_v17 }
 0x184   :  { %v794_v43 = vpop.permute.xlu1 %793  ;;  %v1045_v17 = vmul.f32 %v2245_v14, %v874_v29  ;;  %v1047_v19 = vmul.f32 %v2245_v14, %v2722_v59  ;;  %v1056_v29 = vmul.f32 %v2245_v14, %v2727_v36  ;;  %v2728_v26 = vmax.f32 %v2088_v3, 0.0 }
 0x185   :  { %v896_v54 = vmax.f32 %v2232_v58, 0.0  ;;  %v834_v10 = vmul.f32 %v1823_v34, %v794_v43  ;;  %989 = vadd.xlane.f32.xlu0 %v931_v11  ;;  %999 = vadd.xlane.f32.xlu1 %v936_v35  ;;  %v1058_v24 = vmul.f32 %v2245_v14, %v2729_v33  ;;  %v1055_v51 = vmul.f32 %v2245_v14, %v2730_v0 }
 0x186   :  { %v1053_v47 = vmul.f32 %v2245_v14, %v2728_v26  ;;  %v1060_v38 = vmul.f32 %v2245_v14, %v2731_v4  ;;  %v2732_v3 = vmax.f32 %v2136_v1, 0.0  ;;  %v1062_v35 = vmul.f32 %v2245_v14, %v2733_v52 }
 0x187   :  { %v2248_v12 = vadd.f32 %v834_v10, %v2721_v8  ;;  %v933_v40 = vmul.f32 %v1882_v2, %v896_v54  ;;  %v1059_v9 = vmul.f32 %v2245_v14, %v888_v57  ;;  %v1064_v18 = vmul.f32 %v2245_v14, %v893_v21 }
 0x188   :  { %v1057_v11 = vmul.f32 %v2245_v14, %v2732_v3  ;;  %v1061_v1 = vmul.f32 %v2245_v14, %v890_v46  ;;  %v1066_v37 = vmul.f32 %v2245_v14, %v895_v55  ;;  %v1063_v50 = vmul.f32 %v2245_v14, %v892_v27 }
 0x189   :  { %v898_v34 = vmax.f32 %v2248_v12, 0.0  ;;  %993 = vadd.xlane.f32.xlu0 %v933_v40  ;;  %1073 = vadd.xlane.f32.xlu1 %v1040_v22  ;;  %v1068_v42 = vmul.f32 %v2245_v14, %v897_v56  ;;  %v1065_v25 = vmul.f32 %v2245_v14, %v894_v48  ;;  %v1070_v15 = vmul.f32 %v2245_v14, %v899_v32 }
 0x18a   :  { %v1067_v57 = vmul.f32 %v2245_v14, %v896_v54 }
 0x18b   :  { %v935_v16 = vmul.f32 %v1882_v2, %v898_v34  ;;  %v1041_v2 = vmul.f32 %v2245_v14, %v870_v49  ;;  %v1052_v49 = vmul.f32 %v2245_v14, %v2723_v63  ;;  %v1069_v21 = vmul.f32 %v2245_v14, %v898_v34 }
 0x18d   :  { %997 = vadd.xlane.f32.xlu0 %v935_v16  ;;  %1077 = vadd.xlane.f32.xlu1 %v1042_v7 }
 0x191   :  { %1071 = vadd.xlane.f32.xlu0 %v1039_v45  ;;  %1081 = vadd.xlane.f32.xlu1 %v1044_v61 }
 0x195   :  { %1075 = vadd.xlane.f32.xlu0 %v1041_v2  ;;  %1085 = vadd.xlane.f32.xlu1 %v1046_v39 }
 0x199   :  { %1079 = vadd.xlane.f32.xlu0 %v1043_v53  ;;  %1089 = vadd.xlane.f32.xlu1 %v1048_v41 }
 0x19d   :  { %1083 = vadd.xlane.f32.xlu0 %v1045_v17  ;;  %1093 = vadd.xlane.f32.xlu1 %v1050_v44 }
 0x1a1   :  { %1087 = vadd.xlane.f32.xlu0 %v1047_v19  ;;  %1097 = vadd.xlane.f32.xlu1 %v1052_v49 }
 0x1a5   :  { %1091 = vadd.xlane.f32.xlu0 %v1049_v23  ;;  %1101 = vadd.xlane.f32.xlu1 %v1054_v60 }
 0x1a9   :  { %1095 = vadd.xlane.f32.xlu0 %v1051_v31  ;;  %1105 = vadd.xlane.f32.xlu1 %v1056_v29 }
 0x1ad   :  { %1099 = vadd.xlane.f32.xlu0 %v1053_v47  ;;  %1109 = vadd.xlane.f32.xlu1 %v1058_v24 }
 0x1b1   :  { %1103 = vadd.xlane.f32.xlu0 %v1055_v51  ;;  %1113 = vadd.xlane.f32.xlu1 %v1060_v38 }
 0x1b5   :  { %1107 = vadd.xlane.f32.xlu0 %v1057_v11  ;;  %1117 = vadd.xlane.f32.xlu1 %v1062_v35 }
 0x1b9   :  { %1111 = vadd.xlane.f32.xlu0 %v1059_v9  ;;  %1121 = vadd.xlane.f32.xlu1 %v1064_v18 }
 0x1bd   :  { %1115 = vadd.xlane.f32.xlu0 %v1061_v1  ;;  %1125 = vadd.xlane.f32.xlu1 %v1066_v37 }
 0x1c1   :  { %1119 = vadd.xlane.f32.xlu0 %v1063_v50  ;;  %1129 = vadd.xlane.f32.xlu1 %v1068_v42 }
 0x1c5   :  { %1123 = vadd.xlane.f32.xlu0 %v1065_v25  ;;  %1133 = vadd.xlane.f32.xlu1 %v1070_v15 }
 0x1c9   :  { %1127 = vadd.xlane.f32.xlu0 %v1067_v57 }
 0x1cd   :  { %1131 = vadd.xlane.f32.xlu0 %v1069_v21 }
 0x1d6   :  { %v938_v46 = vpop.xlane.xlu1 %937 }
 0x1d7   :  { %1002 = vst.msk [vmem:[%s2611_s2] sm:$0xff] %vm1001_vm0, %v938_v46 }
 0x1da   :  { %v944_v55 = vpop.xlane.xlu1 %943 }
 0x1db   :  { %1005 = vst.msk [vmem:[%s2611_s2 + $0x18] sm:$0xff] %vm1001_vm0, %v944_v55 }
 0x1de   :  { %v948_v6 = vpop.xlane.xlu1 %947  ;;  %v940_v5 = vpop.xlane.xlu0 %939 }
 0x1df   :  { %1007 = vst.msk [vmem:[%s2611_s2 + $0x28] sm:$0xff] %vm1001_vm0, %v948_v6  ;;  %1003 = vst.msk [vmem:[%s2611_s2 + $0x8] sm:$0xff] %vm1001_vm0, %v940_v5 }
 0x1e2   :  { %v952_v27 = vpop.xlane.xlu1 %951  ;;  %v942_v56 = vpop.xlane.xlu0 %941 }
 0x1e3   :  { %1009 = vst.msk [vmem:[%s2611_s2 + $0x38] sm:$0xff] %vm1001_vm0, %v952_v27  ;;  %1004 = vst.msk [vmem:[%s2611_s2 + $0x10] sm:$0xff] %vm1001_vm0, %v942_v56 }
 0x1e6   :  { %v956_v30 = vpop.xlane.xlu1 %955  ;;  %v946_v20 = vpop.xlane.xlu0 %945 }
 0x1e7   :  { %1011 = vst.msk [vmem:[%s2611_s2 + $0x48] sm:$0xff] %vm1001_vm0, %v956_v30  ;;  %1006 = vst.msk [vmem:[%s2611_s2 + $0x20] sm:$0xff] %vm1001_vm0, %v946_v20 }
 0x1ea   :  { %v960_v48 = vpop.xlane.xlu1 %959  ;;  %v950_v32 = vpop.xlane.xlu0 %949 }
 0x1eb   :  { %1013 = vst.msk [vmem:[%s2611_s2 + $0x58] sm:$0xff] %vm1001_vm0, %v960_v48  ;;  %1008 = vst.msk [vmem:[%s2611_s2 + $0x30] sm:$0xff] %vm1001_vm0, %v950_v32 }
 0x1ee   :  { %v964_v58 = vpop.xlane.xlu1 %963  ;;  %v954_v43 = vpop.xlane.xlu0 %953 }
 0x1ef   :  { %1015 = vst.msk [vmem:[%s2611_s2 + $0x68] sm:$0xff] %vm1001_vm0, %v964_v58  ;;  %1010 = vst.msk [vmem:[%s2611_s2 + $0x40] sm:$0xff] %vm1001_vm0, %v954_v43 }
 0x1f2   :  { %v968_v54 = vpop.xlane.xlu1 %967  ;;  %v958_v10 = vpop.xlane.xlu0 %957 }
 0x1f3   :  { %1017 = vst.msk [vmem:[%s2611_s2 + $0x78] sm:$0xff] %vm1001_vm0, %v968_v54  ;;  %1012 = vst.msk [vmem:[%s2611_s2 + $0x50] sm:$0xff] %vm1001_vm0, %v958_v10 }
 0x1f6   :  { %v972_v14 = vpop.xlane.xlu1 %971  ;;  %v962_v8 = vpop.xlane.xlu0 %961 }
 0x1f7   :  { %1019 = vst.msk [vmem:[%s2611_s2 + $0x88] sm:$0xff] %vm1001_vm0, %v972_v14  ;;  %1014 = vst.msk [vmem:[%s2611_s2 + $0x60] sm:$0xff] %vm1001_vm0, %v962_v8 }
 0x1fa   :  { %v976_v12 = vpop.xlane.xlu1 %975  ;;  %v966_v40 = vpop.xlane.xlu0 %965 }
 0x1fb   :  { %1021 = vst.msk [vmem:[%s2611_s2 + $0x98] sm:$0xff] %vm1001_vm0, %v976_v12  ;;  %1016 = vst.msk [vmem:[%s2611_s2 + $0x70] sm:$0xff] %vm1001_vm0, %v966_v40 }
 0x1fe   :  { %v980_v22 = vpop.xlane.xlu1 %979  ;;  %v970_v34 = vpop.xlane.xlu0 %969 }
 0x1ff   :  { %1023 = vst.msk [vmem:[%s2611_s2 + $0xa8] sm:$0xff] %vm1001_vm0, %v980_v22  ;;  %1018 = vst.msk [vmem:[%s2611_s2 + $0x80] sm:$0xff] %vm1001_vm0, %v970_v34 }
 0x202   :  { %v984_v16 = vpop.xlane.xlu1 %983  ;;  %v974_v7 = vpop.xlane.xlu0 %973 }
 0x203   :  { %1025 = vst.msk [vmem:[%s2611_s2 + $0xb8] sm:$0xff] %vm1001_vm0, %v984_v16  ;;  %1020 = vst.msk [vmem:[%s2611_s2 + $0x90] sm:$0xff] %vm1001_vm0, %v974_v7 }
 0x206   :  { %v988_v45 = vpop.xlane.xlu1 %987  ;;  %v978_v61 = vpop.xlane.xlu0 %977 }
 0x207   :  { %1027 = vst.msk [vmem:[%s2611_s2 + $0xc8] sm:$0xff] %vm1001_vm0, %v988_v45  ;;  %1022 = vst.msk [vmem:[%s2611_s2 + $0xa0] sm:$0xff] %vm1001_vm0, %v978_v61 }
 0x20a   :  { %v992_v2 = vpop.xlane.xlu1 %991  ;;  %v982_v39 = vpop.xlane.xlu0 %981 }
 0x20b   :  { %1029 = vst.msk [vmem:[%s2611_s2 + $0xd8] sm:$0xff] %vm1001_vm0, %v992_v2  ;;  %1024 = vst.msk [vmem:[%s2611_s2 + $0xb0] sm:$0xff] %vm1001_vm0, %v982_v39 }
 0x20e   :  { %v996_v53 = vpop.xlane.xlu1 %995  ;;  %v986_v41 = vpop.xlane.xlu0 %985 }
 0x20f   :  { %1031 = vst.msk [vmem:[%s2611_s2 + $0xe8] sm:$0xff] %vm1001_vm0, %v996_v53  ;;  %1026 = vst.msk [vmem:[%s2611_s2 + $0xc0] sm:$0xff] %vm1001_vm0, %v986_v41 }
 0x212   :  { %v1000_v17 = vpop.xlane.xlu1 %999  ;;  %v990_v44 = vpop.xlane.xlu0 %989 }
 0x213   :  { %1033 = vst.msk [vmem:[%s2611_s2 + $0xf8] sm:$0xff] %vm1001_vm0, %v1000_v17  ;;  %1028 = vst.msk [vmem:[%s2611_s2 + $0xd0] sm:$0xff] %vm1001_vm0, %v990_v44 }
 0x216   :  { %v1074_v59 = vpop.xlane.xlu1 %1073  ;;  %v994_v19 = vpop.xlane.xlu0 %993 }
 0x217   :  { %1137 = vst.msk [vmem:[%s2611_s2 + $0x8] sm:$0xff] %vm1135_vm1, %v1074_v59 }
 0x218   :  { %1030 = vst.msk [vmem:[%s2611_s2 + $0xe0] sm:$0xff] %vm1001_vm0, %v994_v19 }
 0x21a   :  { %v1078_v63 = vpop.xlane.xlu1 %1077  ;;  %v998_v49 = vpop.xlane.xlu0 %997 }
 0x21b   :  { %1139 = vst.msk [vmem:[%s2611_s2 + $0x18] sm:$0xff] %vm1135_vm1, %v1078_v63 }
 0x21c   :  { %1032 = vst.msk [vmem:[%s2611_s2 + $0xf0] sm:$0xff] %vm1001_vm0, %v998_v49 }
 0x21e   :  { %v1082_v62 = vpop.xlane.xlu1 %1081  ;;  %v1072_v23 = vpop.xlane.xlu0 %1071 }
 0x21f   :  { %1141 = vst.msk [vmem:[%s2611_s2 + $0x28] sm:$0xff] %vm1135_vm1, %v1082_v62  ;;  %1136 = vst.msk [vmem:[%s2611_s2] sm:$0xff] %vm1135_vm1, %v1072_v23 }
 0x222   :  { %v1086_v13 = vpop.xlane.xlu1 %1085  ;;  %v1076_v60 = vpop.xlane.xlu0 %1075 }
 0x223   :  { %1143 = vst.msk [vmem:[%s2611_s2 + $0x38] sm:$0xff] %vm1135_vm1, %v1086_v13  ;;  %1138 = vst.msk [vmem:[%s2611_s2 + $0x10] sm:$0xff] %vm1135_vm1, %v1076_v60 }
 0x226   :  { %v1090_v28 = vpop.xlane.xlu1 %1089  ;;  %v1080_v31 = vpop.xlane.xlu0 %1079 }
 0x227   :  { %1145 = vst.msk [vmem:[%s2611_s2 + $0x48] sm:$0xff] %vm1135_vm1, %v1090_v28  ;;  %1140 = vst.msk [vmem:[%s2611_s2 + $0x20] sm:$0xff] %vm1135_vm1, %v1080_v31 }
 0x22a   :  { %v1094_v36 = vpop.xlane.xlu1 %1093  ;;  %v1084_v29 = vpop.xlane.xlu0 %1083 }
 0x22b   :  { %1147 = vst.msk [vmem:[%s2611_s2 + $0x58] sm:$0xff] %vm1135_vm1, %v1094_v36  ;;  %1142 = vst.msk [vmem:[%s2611_s2 + $0x30] sm:$0xff] %vm1135_vm1, %v1084_v29 }
 0x22e   :  { %v1098_v26 = vpop.xlane.xlu1 %1097  ;;  %v1088_v47 = vpop.xlane.xlu0 %1087 }
 0x22f   :  { %1149 = vst.msk [vmem:[%s2611_s2 + $0x68] sm:$0xff] %vm1135_vm1, %v1098_v26  ;;  %1144 = vst.msk [vmem:[%s2611_s2 + $0x40] sm:$0xff] %vm1135_vm1, %v1088_v47 }
 0x232   :  { %v1102_v33 = vpop.xlane.xlu1 %1101  ;;  %v1092_v24 = vpop.xlane.xlu0 %1091 }
 0x233   :  { %1151 = vst.msk [vmem:[%s2611_s2 + $0x78] sm:$0xff] %vm1135_vm1, %v1102_v33  ;;  %1146 = vst.msk [vmem:[%s2611_s2 + $0x50] sm:$0xff] %vm1135_vm1, %v1092_v24 }
 0x236   :  { %v1106_v0 = vpop.xlane.xlu1 %1105  ;;  %v1096_v51 = vpop.xlane.xlu0 %1095 }
 0x237   :  { %1153 = vst.msk [vmem:[%s2611_s2 + $0x88] sm:$0xff] %vm1135_vm1, %v1106_v0  ;;  %1148 = vst.msk [vmem:[%s2611_s2 + $0x60] sm:$0xff] %vm1135_vm1, %v1096_v51 }
 0x23a   :  { %v1110_v4 = vpop.xlane.xlu1 %1109  ;;  %v1100_v38 = vpop.xlane.xlu0 %1099 }
 0x23b   :  { %1155 = vst.msk [vmem:[%s2611_s2 + $0x98] sm:$0xff] %vm1135_vm1, %v1110_v4  ;;  %1150 = vst.msk [vmem:[%s2611_s2 + $0x70] sm:$0xff] %vm1135_vm1, %v1100_v38 }
 0x23e   :  { %v1114_v3 = vpop.xlane.xlu1 %1113  ;;  %v1104_v11 = vpop.xlane.xlu0 %1103 }
 0x23f   :  { %1157 = vst.msk [vmem:[%s2611_s2 + $0xa8] sm:$0xff] %vm1135_vm1, %v1114_v3  ;;  %1152 = vst.msk [vmem:[%s2611_s2 + $0x80] sm:$0xff] %vm1135_vm1, %v1104_v11 }
 0x242   :  { %v1118_v52 = vpop.xlane.xlu1 %1117  ;;  %v1108_v35 = vpop.xlane.xlu0 %1107 }
 0x243   :  { %1159 = vst.msk [vmem:[%s2611_s2 + $0xb8] sm:$0xff] %vm1135_vm1, %v1118_v52  ;;  %1154 = vst.msk [vmem:[%s2611_s2 + $0x90] sm:$0xff] %vm1135_vm1, %v1108_v35 }
 0x246   :  { %v1122_v9 = vpop.xlane.xlu1 %1121  ;;  %v1112_v18 = vpop.xlane.xlu0 %1111 }
 0x247   :  { %1161 = vst.msk [vmem:[%s2611_s2 + $0xc8] sm:$0xff] %vm1135_vm1, %v1122_v9  ;;  %1156 = vst.msk [vmem:[%s2611_s2 + $0xa0] sm:$0xff] %vm1135_vm1, %v1112_v18 }
 0x24a   :  { %v1126_v1 = vpop.xlane.xlu1 %1125  ;;  %v1116_v37 = vpop.xlane.xlu0 %1115 }
 0x24b   :  { %1163 = vst.msk [vmem:[%s2611_s2 + $0xd8] sm:$0xff] %vm1135_vm1, %v1126_v1  ;;  %1158 = vst.msk [vmem:[%s2611_s2 + $0xb0] sm:$0xff] %vm1135_vm1, %v1116_v37 }
 0x24e   :  { %v1130_v50 = vpop.xlane.xlu1 %1129  ;;  %v1120_v42 = vpop.xlane.xlu0 %1119 }
 0x24f   :  { %1165 = vst.msk [vmem:[%s2611_s2 + $0xe8] sm:$0xff] %vm1135_vm1, %v1130_v50  ;;  %1160 = vst.msk [vmem:[%s2611_s2 + $0xc0] sm:$0xff] %vm1135_vm1, %v1120_v42 }
 0x252   :  { %v1134_v25 = vpop.xlane.xlu1 %1133  ;;  %v1124_v15 = vpop.xlane.xlu0 %1123 }
 0x253   :  { %1167 = vst.msk [vmem:[%s2611_s2 + $0xf8] sm:$0xff] %vm1135_vm1, %v1134_v25  ;;  %1162 = vst.msk [vmem:[%s2611_s2 + $0xd0] sm:$0xff] %vm1135_vm1, %v1124_v15 }
 0x256   :  { %v1128_v57 = vpop.xlane.xlu0 %1127 }
 0x257   :  { %1164 = vst.msk [vmem:[%s2611_s2 + $0xe0] sm:$0xff] %vm1135_vm1, %v1128_v57 }
 0x25a   :  { %v1132_v21 = vpop.xlane.xlu0 %1131 }
 0x25b   :  { %1166 = vst.msk [vmem:[%s2611_s2 + $0xf0] sm:$0xff] %vm1135_vm1, %v1132_v21 }

</bundles_post_ra>
